<compile_context>
chip_gen: v6e
topology: v6e:2x2x1
jax: 0.10.0
libtpu: 0.0.40
codegen_flags: <defaults>
</compile_context>

<pallas_src>
import functools

import jax
import jax.numpy as jnp
import numpy as np
from jax import lax
from jax.experimental import pallas as pl
from jax.experimental.pallas import tpu as pltpu

INPUT_DIM = 6
HIDDEN_DIM = 64
OUTPUT_DIM = 3
GATE = 128                      # lane stride per gate (>= HIDDEN_DIM, multiple of 128)


def _round_up(x, m):
    return ((x + m - 1) // m) * m


def _cdiv(a, b):
    return -(-a // b)


def _plan_time(T, bt):
    """Balanced time chunks; ~4 MiB per streamed-gx buffer (Pallas double-buffers it)."""
    per_step_bytes = bt * 3 * GATE * 4
    cap = max(8, (4 << 20) // per_step_bytes)
    if T <= cap:
        return T, T, 1
    n_chunks = _cdiv(T, cap)
    t_chunk = _cdiv(T, n_chunks)          # balanced chunks (no pathological 2x tail)
    n_chunks = _cdiv(T, t_chunk)          # re-derive so the tail trip count is >= 1
    return t_chunk, n_chunks * t_chunk, n_chunks


def gru_fc_kernel(gx_ref, whh_ref, bhn_ref, wfc_ref, bfc_ref, out_ref, h_ref, *,
                  t_chunk, tail_steps, n_chunks):
    G = GATE
    bt = h_ref.shape[0]
    chunk = pl.program_id(1)

    @pl.when(chunk == 0)
    def _():
        h_ref[...] = jnp.zeros_like(h_ref)          # h0 = 0 (PyTorch default)

    whh = whh_ref[...]                              # (G, 3G), loaded once per chunk
    bhn = jnp.broadcast_to(bhn_ref[...], (bt, G))   # hoisted broadcast (b_hn only)

    def step(lt, h):
        gx_t = gx_ref[lt]                           # (bt, 3G) = x W_ih + b_ih (+ b_hr/b_hz)
        gh = jnp.dot(h, whh, preferred_element_type=jnp.float32)
        r = jax.nn.sigmoid(gx_t[:, :G] + gh[:, :G])
        z = jax.nn.sigmoid(gx_t[:, G:2 * G] + gh[:, G:2 * G])
        n = jnp.tanh(gx_t[:, 2 * G:] + r * (gh[:, 2 * G:] + bhn))
        return (1.0 - z) * n + z * h                # upper (G-H) lanes stay exactly 0

    def run(trip, h0):
        return lax.fori_loop(0, trip, step, h0, unroll=True if trip <= 32 else 8)

    def finish(h0):
        h_fin = run(tail_steps, h0)                 # exact static tail trip count: no mask
        h_ref[...] = h_fin
        out_ref[...] = (jnp.dot(h_fin, wfc_ref[...],
                                preferred_element_type=jnp.float32)
                        + bfc_ref[...])

    if n_chunks == 1:
        finish(h_ref[...])
    else:
        @pl.when(chunk < n_chunks - 1)
        def _():
            h_ref[...] = run(t_chunk, h_ref[...])   # persist h across chunks

        @pl.when(chunk == n_chunks - 1)
        def _():
            finish(h_ref[...])


def pack_params(params):
    """Per-gate (r, z, n) params -> lane-aligned (gate stride 128) kernel layout."""
    wih, whh, bih, bhh, wfc, bfc = params
    H, G = HIDDEN_DIM, GATE

    def pad_cols(w):                                # (.., H) -> (.., G)
        return jnp.pad(w, ((0, 0), (0, G - H)))

    wih_p = jnp.concatenate([pad_cols(wih[0]), pad_cols(wih[1]), pad_cols(wih[2])],
                            axis=1)                 # (D_in, 3G)
    whh_p = jnp.concatenate([pad_cols(whh[0]), pad_cols(whh[1]), pad_cols(whh[2])],
                            axis=1)                 # (H, 3G)
    whh_p = jnp.pad(whh_p, ((0, G - H), (0, 0)))    # (G, 3G); zero rows H..G-1
    # b_hr / b_hz add linearly into the r / z pre-activations -> fold into b_ih.
    bcomb_p = jnp.concatenate([pad_cols(bih[0] + bhh[0]),
                               pad_cols(bih[1] + bhh[1]),
                               pad_cols(bih[2])], axis=1)   # (1, 3G)
    bhn_p = pad_cols(bhh[2])                                # (1, G); stays inside r*(.)
    wfc_p = jnp.pad(wfc, ((0, G - H), (0, 0)))              # (G, O)
    return wih_p, bcomb_p, whh_p, bhn_p, wfc_p, bfc


def gru_rps_forward(x, packed):
    """x: (B, T, INPUT_DIM) batch-first float32.  Returns (B, OUTPUT_DIM)."""
    wih_p, bcomb_p, whh_p, bhn_p, wfc_p, bfc = packed
    B, T, D = x.shape
    assert D == INPUT_DIM
    O, G = OUTPUT_DIM, GATE

    b_pad = _round_up(B, 8)
    if b_pad >= 16:                       # give v7x's second TensorCore a batch tile
        bt = _round_up(_cdiv(b_pad, 2), 8)
        b_pad = 2 * bt
        n_btiles = 2
    else:
        bt, n_btiles = b_pad, 1

    t_chunk, t_pad, n_chunks = _plan_time(T, bt)
    tail_steps = T - (n_chunks - 1) * t_chunk       # static, >= 1

    # Bulk input projection as a plain XLA GEMM, streamed lane-dense and time-major.
    gx = (x.reshape(B * T, D) @ wih_p + bcomb_p).reshape(B, T, 3 * G)
    gx = jnp.transpose(gx, (1, 0, 2))               # (T, B, 3G)
    gx = jnp.pad(gx, ((0, t_pad - T), (0, b_pad - B), (0, 0)))

    kernel = functools.partial(gru_fc_kernel, t_chunk=t_chunk,
                               tail_steps=tail_steps, n_chunks=n_chunks)

    out = pl.pallas_call(
        kernel,
        out_shape=jax.ShapeDtypeStruct((b_pad, O), jnp.float32),
        grid_spec=pltpu.PrefetchScalarGridSpec(
            num_scalar_prefetch=0,
            grid=(n_btiles, n_chunks),
            in_specs=[
                pl.BlockSpec((t_chunk, bt, 3 * G), lambda bi, c: (c, bi, 0)),  # gx stream
                pl.BlockSpec((G, 3 * G), lambda bi, c: (0, 0)),                # W_hh
                pl.BlockSpec((1, G), lambda bi, c: (0, 0)),                    # b_hn
                pl.BlockSpec((G, O), lambda bi, c: (0, 0)),                    # W_fc
                pl.BlockSpec((1, O), lambda bi, c: (0, 0)),                    # b_fc
            ],
            out_specs=pl.BlockSpec((bt, O), lambda bi, c: (bi, 0)),
            scratch_shapes=[pltpu.VMEM((bt, G), jnp.float32)],                 # running h
        ),
        compiler_params=pltpu.CompilerParams(
            dimension_semantics=("parallel", "arbitrary"),   # batch parallel, time serial
            vmem_limit_bytes=32 * 1024 * 1024),
    )(gx, whh_p, bhn_p, wfc_p, bfc)

    return out[:B]


def init_params(key):
    """Deterministic synthetic parameters (PyTorch-style U(-1/sqrt(H), 1/sqrt(H)))."""
    k = 1.0 / np.sqrt(HIDDEN_DIM)
    keys = jax.random.split(key, 6)
    wih = jax.random.uniform(keys[0], (3, INPUT_DIM, HIDDEN_DIM), jnp.float32, -k, k)
    whh = jax.random.uniform(keys[1], (3, HIDDEN_DIM, HIDDEN_DIM), jnp.float32, -k, k)
    bih = jax.random.uniform(keys[2], (3, 1, HIDDEN_DIM), jnp.float32, -k, k)
    bhh = jax.random.uniform(keys[3], (3, 1, HIDDEN_DIM), jnp.float32, -k, k)
    wfc = jax.random.uniform(keys[4], (HIDDEN_DIM, OUTPUT_DIM), jnp.float32, -k, k)
    bfc = jax.random.uniform(keys[5], (1, OUTPUT_DIM), jnp.float32, -k, k)
    return (wih, whh, bih, bhh, wfc, bfc)


def reference_forward(x, params):
    """Pure-JAX reference with PyTorch GRU gate semantics (r, z, n order)."""
    wih, whh, bih, bhh, wfc, bfc = params
    B = x.shape[0]

    def cell(h, x_t):
        r = jax.nn.sigmoid(x_t @ wih[0] + bih[0] + h @ whh[0] + bhh[0])
        z = jax.nn.sigmoid(x_t @ wih[1] + bih[1] + h @ whh[1] + bhh[1])
        n = jnp.tanh(x_t @ wih[2] + bih[2] + r * (h @ whh[2] + bhh[2]))
        return (1.0 - z) * n + z * h, None

    h0 = jnp.zeros((B, HIDDEN_DIM), jnp.float32)
    h_last, _ = lax.scan(cell, h0, jnp.transpose(x, (1, 0, 2)))
    return h_last @ wfc + bfc


if __name__ == "__main__":
    key = jax.random.PRNGKey(0)
    k_x, k_p = jax.random.split(key)

    B, T = 2, 8
    x = jax.random.normal(k_x, (B, T, INPUT_DIM), jnp.float32)
    params = init_params(k_p)
    packed = pack_params(params)

    out = jax.block_until_ready(gru_rps_forward(x, packed))
    ref = jax.block_until_ready(reference_forward(x, params))

    assert out.shape == (B, OUTPUT_DIM)
    np.testing.assert_allclose(np.asarray(out), np.asarray(ref), rtol=1e-5, atol=1e-5)
    print("KERNEL_OK")
</pallas_src>

<mosaic_0001>
module attributes {stable_mosaic.version = 11 : i64} {
  func.func @gru_fc_kernel(%arg0: i32, %arg1: i32, %arg2: memref<8x8x384xf32, #tpu.memory_space<vmem>>, %arg3: memref<128x384xf32, #tpu.memory_space<vmem>>, %arg4: memref<1x128xf32, #tpu.memory_space<vmem>>, %arg5: memref<128x3xf32, #tpu.memory_space<vmem>>, %arg6: memref<1x3xf32, #tpu.memory_space<vmem>>, %arg7: memref<8x3xf32, #tpu.memory_space<vmem>>, %arg8: memref<8x128xf32, #tpu.memory_space<vmem>>) attributes {dimension_semantics = [#tpu.dimension_semantics<parallel>, #tpu.dimension_semantics<arbitrary>], iteration_bounds = array<i64: 1, 1>, scalar_prefetch = 0 : i64, scratch_operands = 1 : i64, tpu.core_type = #tpu.core_type<tc>, window_params = [{transform_indices = @transform_0, window_bounds = array<i64: 8, 8, 384>}, {pipeline_mode = #tpu.pipeline_mode<synchronous>, transform_indices = @transform_1, window_bounds = array<i64: 128, 384>}, {pipeline_mode = #tpu.pipeline_mode<synchronous>, transform_indices = @transform_2, window_bounds = array<i64: 1, 128>}, {pipeline_mode = #tpu.pipeline_mode<synchronous>, transform_indices = @transform_3, window_bounds = array<i64: 128, 3>}, {pipeline_mode = #tpu.pipeline_mode<synchronous>, transform_indices = @transform_4, window_bounds = array<i64: 1, 3>}, {transform_indices = @transform_5, window_bounds = array<i64: 8, 3>}]} {
    %c0_i32 = arith.constant 0 : i32
    %0 = arith.cmpi eq, %arg1, %c0_i32 : i32
    %1 = arith.extui %0 : i1 to i32
    %c0_i32_0 = arith.constant 0 : i32
    %2 = arith.cmpi ne, %1, %c0_i32_0 : i32
    scf.if %2 {
      %cst_63 = arith.constant 0.000000e+00 : f32
      %263 = vector.broadcast %cst_63 : f32 to vector<8x128xf32>
      %c0_64 = arith.constant 0 : index
      %c0_65 = arith.constant 0 : index
      %264 = vector.load %arg8[%c0_64, %c0_65] : memref<8x128xf32, #tpu.memory_space<vmem>>, vector<8x128xf32>
      tpu.vector_store %arg8[%c0_64, %c0_65], %263 {strides = array<i32>} : memref<8x128xf32, #tpu.memory_space<vmem>>, vector<8x128xf32>,
    } else {
    }
    %c0 = arith.constant 0 : index
    %c0_1 = arith.constant 0 : index
    %3 = vector.load %arg3[%c0, %c0_1] : memref<128x384xf32, #tpu.memory_space<vmem>>, vector<128x384xf32>
    %c0_2 = arith.constant 0 : index
    %c0_3 = arith.constant 0 : index
    %4 = vector.load %arg4[%c0_2, %c0_3] : memref<1x128xf32, #tpu.memory_space<vmem>>, vector<1x128xf32>
    %5 = vector.shape_cast %4 : vector<1x128xf32> to vector<1x128xf32>
    %6 = vector.broadcast %5 : vector<1x128xf32> to vector<8x128xf32>
    %c0_4 = arith.constant 0 : index
    %c0_5 = arith.constant 0 : index
    %7 = vector.load %arg8[%c0_4, %c0_5] : memref<8x128xf32, #tpu.memory_space<vmem>>, vector<8x128xf32>
    %c0_i32_6 = arith.constant 0 : i32
    %8 = arith.index_cast %c0_i32_6 : i32 to index
    %c0_7 = arith.constant 0 : index
    %c0_8 = arith.constant 0 : index
    %9 = vector.load %arg2[%8, %c0_7, %c0_8] : memref<8x8x384xf32, #tpu.memory_space<vmem>>, vector<1x8x384xf32>
    %10 = vector.shape_cast %9 : vector<1x8x384xf32> to vector<8x384xf32>
    %cst = arith.constant dense<0.000000e+00> : vector<8x384xf32>
    %11 = tpu.matmul %7, %3, %cst {dimension_numbers = #tpu.dot_dimension_numbers<[1], [0], [0], [1], [0, 0, 1, 1], [], []>} : vector<8x128xf32>, vector<128x384xf32>, vector<8x384xf32> -> vector<8x384xf32>
    %12 = vector.extract_strided_slice %10 {offsets = [0, 0], sizes = [8, 128], strides = [1, 1]} : vector<8x384xf32> to vector<8x128xf32>
    %13 = vector.extract_strided_slice %11 {offsets = [0, 0], sizes = [8, 128], strides = [1, 1]} : vector<8x384xf32> to vector<8x128xf32>
    %14 = arith.addf %12, %13 : vector<8x128xf32>
    %15 = arith.negf %14 : vector<8x128xf32>
    %16 = math.exp %15 : vector<8x128xf32>
    %cst_9 = arith.constant 1.000000e+00 : f32
    %17 = vector.broadcast %cst_9 : f32 to vector<8x128xf32>
    %18 = arith.addf %17, %16 : vector<8x128xf32>
    %19 = arith.divf %17, %18 : vector<8x128xf32>
    %20 = vector.extract_strided_slice %10 {offsets = [0, 128], sizes = [8, 128], strides = [1, 1]} : vector<8x384xf32> to vector<8x128xf32>
    %21 = vector.extract_strided_slice %11 {offsets = [0, 128], sizes = [8, 128], strides = [1, 1]} : vector<8x384xf32> to vector<8x128xf32>
    %22 = arith.addf %20, %21 : vector<8x128xf32>
    %23 = arith.negf %22 : vector<8x128xf32>
    %24 = math.exp %23 : vector<8x128xf32>
    %cst_10 = arith.constant 1.000000e+00 : f32
    %25 = vector.broadcast %cst_10 : f32 to vector<8x128xf32>
    %26 = arith.addf %25, %24 : vector<8x128xf32>
    %27 = arith.divf %25, %26 : vector<8x128xf32>
    %28 = vector.extract_strided_slice %10 {offsets = [0, 256], sizes = [8, 128], strides = [1, 1]} : vector<8x384xf32> to vector<8x128xf32>
    %29 = vector.extract_strided_slice %11 {offsets = [0, 256], sizes = [8, 128], strides = [1, 1]} : vector<8x384xf32> to vector<8x128xf32>
    %30 = arith.addf %29, %6 : vector<8x128xf32>
    %31 = arith.mulf %19, %30 : vector<8x128xf32>
    %32 = arith.addf %28, %31 : vector<8x128xf32>
    %33 = math.tanh %32 : vector<8x128xf32>
    %cst_11 = arith.constant 1.000000e+00 : f32
    %34 = vector.broadcast %cst_11 : f32 to vector<8x128xf32>
    %35 = arith.subf %34, %27 : vector<8x128xf32>
    %36 = arith.mulf %35, %33 : vector<8x128xf32>
    %37 = arith.mulf %27, %7 : vector<8x128xf32>
    %38 = arith.addf %36, %37 : vector<8x128xf32>
    %c1_i32 = arith.constant 1 : i32
    %39 = arith.index_cast %c1_i32 : i32 to index
    %c0_12 = arith.constant 0 : index
    %c0_13 = arith.constant 0 : index
    %40 = vector.load %arg2[%39, %c0_12, %c0_13] : memref<8x8x384xf32, #tpu.memory_space<vmem>>, vector<1x8x384xf32>
    %41 = vector.shape_cast %40 : vector<1x8x384xf32> to vector<8x384xf32>
    %cst_14 = arith.constant dense<0.000000e+00> : vector<8x384xf32>
    %42 = tpu.matmul %38, %3, %cst_14 {dimension_numbers = #tpu.dot_dimension_numbers<[1], [0], [0], [1], [0, 0, 1, 1], [], []>} : vector<8x128xf32>, vector<128x384xf32>, vector<8x384xf32> -> vector<8x384xf32>
    %43 = vector.extract_strided_slice %41 {offsets = [0, 0], sizes = [8, 128], strides = [1, 1]} : vector<8x384xf32> to vector<8x128xf32>
    %44 = vector.extract_strided_slice %42 {offsets = [0, 0], sizes = [8, 128], strides = [1, 1]} : vector<8x384xf32> to vector<8x128xf32>
    %45 = arith.addf %43, %44 : vector<8x128xf32>
    %46 = arith.negf %45 : vector<8x128xf32>
    %47 = math.exp %46 : vector<8x128xf32>
    %cst_15 = arith.constant 1.000000e+00 : f32
    %48 = vector.broadcast %cst_15 : f32 to vector<8x128xf32>
    %49 = arith.addf %48, %47 : vector<8x128xf32>
    %50 = arith.divf %48, %49 : vector<8x128xf32>
    %51 = vector.extract_strided_slice %41 {offsets = [0, 128], sizes = [8, 128], strides = [1, 1]} : vector<8x384xf32> to vector<8x128xf32>
    %52 = vector.extract_strided_slice %42 {offsets = [0, 128], sizes = [8, 128], strides = [1, 1]} : vector<8x384xf32> to vector<8x128xf32>
    %53 = arith.addf %51, %52 : vector<8x128xf32>
    %54 = arith.negf %53 : vector<8x128xf32>
    %55 = math.exp %54 : vector<8x128xf32>
    %cst_16 = arith.constant 1.000000e+00 : f32
    %56 = vector.broadcast %cst_16 : f32 to vector<8x128xf32>
    %57 = arith.addf %56, %55 : vector<8x128xf32>
    %58 = arith.divf %56, %57 : vector<8x128xf32>
    %59 = vector.extract_strided_slice %41 {offsets = [0, 256], sizes = [8, 128], strides = [1, 1]} : vector<8x384xf32> to vector<8x128xf32>
    %60 = vector.extract_strided_slice %42 {offsets = [0, 256], sizes = [8, 128], strides = [1, 1]} : vector<8x384xf32> to vector<8x128xf32>
    %61 = arith.addf %60, %6 : vector<8x128xf32>
    %62 = arith.mulf %50, %61 : vector<8x128xf32>
    %63 = arith.addf %59, %62 : vector<8x128xf32>
    %64 = math.tanh %63 : vector<8x128xf32>
    %cst_17 = arith.constant 1.000000e+00 : f32
    %65 = vector.broadcast %cst_17 : f32 to vector<8x128xf32>
    %66 = arith.subf %65, %58 : vector<8x128xf32>
    %67 = arith.mulf %66, %64 : vector<8x128xf32>
    %68 = arith.mulf %58, %38 : vector<8x128xf32>
    %69 = arith.addf %67, %68 : vector<8x128xf32>
    %c2_i32 = arith.constant 2 : i32
    %70 = arith.index_cast %c2_i32 : i32 to index
    %c0_18 = arith.constant 0 : index
    %c0_19 = arith.constant 0 : index
    %71 = vector.load %arg2[%70, %c0_18, %c0_19] : memref<8x8x384xf32, #tpu.memory_space<vmem>>, vector<1x8x384xf32>
    %72 = vector.shape_cast %71 : vector<1x8x384xf32> to vector<8x384xf32>
    %cst_20 = arith.constant dense<0.000000e+00> : vector<8x384xf32>
    %73 = tpu.matmul %69, %3, %cst_20 {dimension_numbers = #tpu.dot_dimension_numbers<[1], [0], [0], [1], [0, 0, 1, 1], [], []>} : vector<8x128xf32>, vector<128x384xf32>, vector<8x384xf32> -> vector<8x384xf32>
    %74 = vector.extract_strided_slice %72 {offsets = [0, 0], sizes = [8, 128], strides = [1, 1]} : vector<8x384xf32> to vector<8x128xf32>
    %75 = vector.extract_strided_slice %73 {offsets = [0, 0], sizes = [8, 128], strides = [1, 1]} : vector<8x384xf32> to vector<8x128xf32>
    %76 = arith.addf %74, %75 : vector<8x128xf32>
    %77 = arith.negf %76 : vector<8x128xf32>
    %78 = math.exp %77 : vector<8x128xf32>
    %cst_21 = arith.constant 1.000000e+00 : f32
    %79 = vector.broadcast %cst_21 : f32 to vector<8x128xf32>
    %80 = arith.addf %79, %78 : vector<8x128xf32>
    %81 = arith.divf %79, %80 : vector<8x128xf32>
    %82 = vector.extract_strided_slice %72 {offsets = [0, 128], sizes = [8, 128], strides = [1, 1]} : vector<8x384xf32> to vector<8x128xf32>
    %83 = vector.extract_strided_slice %73 {offsets = [0, 128], sizes = [8, 128], strides = [1, 1]} : vector<8x384xf32> to vector<8x128xf32>
    %84 = arith.addf %82, %83 : vector<8x128xf32>
    %85 = arith.negf %84 : vector<8x128xf32>
    %86 = math.exp %85 : vector<8x128xf32>
    %cst_22 = arith.constant 1.000000e+00 : f32
    %87 = vector.broadcast %cst_22 : f32 to vector<8x128xf32>
    %88 = arith.addf %87, %86 : vector<8x128xf32>
    %89 = arith.divf %87, %88 : vector<8x128xf32>
    %90 = vector.extract_strided_slice %72 {offsets = [0, 256], sizes = [8, 128], strides = [1, 1]} : vector<8x384xf32> to vector<8x128xf32>
    %91 = vector.extract_strided_slice %73 {offsets = [0, 256], sizes = [8, 128], strides = [1, 1]} : vector<8x384xf32> to vector<8x128xf32>
    %92 = arith.addf %91, %6 : vector<8x128xf32>
    %93 = arith.mulf %81, %92 : vector<8x128xf32>
    %94 = arith.addf %90, %93 : vector<8x128xf32>
    %95 = math.tanh %94 : vector<8x128xf32>
    %cst_23 = arith.constant 1.000000e+00 : f32
    %96 = vector.broadcast %cst_23 : f32 to vector<8x128xf32>
    %97 = arith.subf %96, %89 : vector<8x128xf32>
    %98 = arith.mulf %97, %95 : vector<8x128xf32>
    %99 = arith.mulf %89, %69 : vector<8x128xf32>
    %100 = arith.addf %98, %99 : vector<8x128xf32>
    %c3_i32 = arith.constant 3 : i32
    %101 = arith.index_cast %c3_i32 : i32 to index
    %c0_24 = arith.constant 0 : index
    %c0_25 = arith.constant 0 : index
    %102 = vector.load %arg2[%101, %c0_24, %c0_25] : memref<8x8x384xf32, #tpu.memory_space<vmem>>, vector<1x8x384xf32>
    %103 = vector.shape_cast %102 : vector<1x8x384xf32> to vector<8x384xf32>
    %cst_26 = arith.constant dense<0.000000e+00> : vector<8x384xf32>
    %104 = tpu.matmul %100, %3, %cst_26 {dimension_numbers = #tpu.dot_dimension_numbers<[1], [0], [0], [1], [0, 0, 1, 1], [], []>} : vector<8x128xf32>, vector<128x384xf32>, vector<8x384xf32> -> vector<8x384xf32>
    %105 = vector.extract_strided_slice %103 {offsets = [0, 0], sizes = [8, 128], strides = [1, 1]} : vector<8x384xf32> to vector<8x128xf32>
    %106 = vector.extract_strided_slice %104 {offsets = [0, 0], sizes = [8, 128], strides = [1, 1]} : vector<8x384xf32> to vector<8x128xf32>
    %107 = arith.addf %105, %106 : vector<8x128xf32>
    %108 = arith.negf %107 : vector<8x128xf32>
    %109 = math.exp %108 : vector<8x128xf32>
    %cst_27 = arith.constant 1.000000e+00 : f32
    %110 = vector.broadcast %cst_27 : f32 to vector<8x128xf32>
    %111 = arith.addf %110, %109 : vector<8x128xf32>
    %112 = arith.divf %110, %111 : vector<8x128xf32>
    %113 = vector.extract_strided_slice %103 {offsets = [0, 128], sizes = [8, 128], strides = [1, 1]} : vector<8x384xf32> to vector<8x128xf32>
    %114 = vector.extract_strided_slice %104 {offsets = [0, 128], sizes = [8, 128], strides = [1, 1]} : vector<8x384xf32> to vector<8x128xf32>
    %115 = arith.addf %113, %114 : vector<8x128xf32>
    %116 = arith.negf %115 : vector<8x128xf32>
    %117 = math.exp %116 : vector<8x128xf32>
    %cst_28 = arith.constant 1.000000e+00 : f32
    %118 = vector.broadcast %cst_28 : f32 to vector<8x128xf32>
    %119 = arith.addf %118, %117 : vector<8x128xf32>
    %120 = arith.divf %118, %119 : vector<8x128xf32>
    %121 = vector.extract_strided_slice %103 {offsets = [0, 256], sizes = [8, 128], strides = [1, 1]} : vector<8x384xf32> to vector<8x128xf32>
    %122 = vector.extract_strided_slice %104 {offsets = [0, 256], sizes = [8, 128], strides = [1, 1]} : vector<8x384xf32> to vector<8x128xf32>
    %123 = arith.addf %122, %6 : vector<8x128xf32>
    %124 = arith.mulf %112, %123 : vector<8x128xf32>
    %125 = arith.addf %121, %124 : vector<8x128xf32>
    %126 = math.tanh %125 : vector<8x128xf32>
    %cst_29 = arith.constant 1.000000e+00 : f32
    %127 = vector.broadcast %cst_29 : f32 to vector<8x128xf32>
    %128 = arith.subf %127, %120 : vector<8x128xf32>
    %129 = arith.mulf %128, %126 : vector<8x128xf32>
    %130 = arith.mulf %120, %100 : vector<8x128xf32>
    %131 = arith.addf %129, %130 : vector<8x128xf32>
    %c4_i32 = arith.constant 4 : i32
    %132 = arith.index_cast %c4_i32 : i32 to index
    %c0_30 = arith.constant 0 : index
    %c0_31 = arith.constant 0 : index
    %133 = vector.load %arg2[%132, %c0_30, %c0_31] : memref<8x8x384xf32, #tpu.memory_space<vmem>>, vector<1x8x384xf32>
    %134 = vector.shape_cast %133 : vector<1x8x384xf32> to vector<8x384xf32>
    %cst_32 = arith.constant dense<0.000000e+00> : vector<8x384xf32>
    %135 = tpu.matmul %131, %3, %cst_32 {dimension_numbers = #tpu.dot_dimension_numbers<[1], [0], [0], [1], [0, 0, 1, 1], [], []>} : vector<8x128xf32>, vector<128x384xf32>, vector<8x384xf32> -> vector<8x384xf32>
    %136 = vector.extract_strided_slice %134 {offsets = [0, 0], sizes = [8, 128], strides = [1, 1]} : vector<8x384xf32> to vector<8x128xf32>
    %137 = vector.extract_strided_slice %135 {offsets = [0, 0], sizes = [8, 128], strides = [1, 1]} : vector<8x384xf32> to vector<8x128xf32>
    %138 = arith.addf %136, %137 : vector<8x128xf32>
    %139 = arith.negf %138 : vector<8x128xf32>
    %140 = math.exp %139 : vector<8x128xf32>
    %cst_33 = arith.constant 1.000000e+00 : f32
    %141 = vector.broadcast %cst_33 : f32 to vector<8x128xf32>
    %142 = arith.addf %141, %140 : vector<8x128xf32>
    %143 = arith.divf %141, %142 : vector<8x128xf32>
    %144 = vector.extract_strided_slice %134 {offsets = [0, 128], sizes = [8, 128], strides = [1, 1]} : vector<8x384xf32> to vector<8x128xf32>
    %145 = vector.extract_strided_slice %135 {offsets = [0, 128], sizes = [8, 128], strides = [1, 1]} : vector<8x384xf32> to vector<8x128xf32>
    %146 = arith.addf %144, %145 : vector<8x128xf32>
    %147 = arith.negf %146 : vector<8x128xf32>
    %148 = math.exp %147 : vector<8x128xf32>
    %cst_34 = arith.constant 1.000000e+00 : f32
    %149 = vector.broadcast %cst_34 : f32 to vector<8x128xf32>
    %150 = arith.addf %149, %148 : vector<8x128xf32>
    %151 = arith.divf %149, %150 : vector<8x128xf32>
    %152 = vector.extract_strided_slice %134 {offsets = [0, 256], sizes = [8, 128], strides = [1, 1]} : vector<8x384xf32> to vector<8x128xf32>
    %153 = vector.extract_strided_slice %135 {offsets = [0, 256], sizes = [8, 128], strides = [1, 1]} : vector<8x384xf32> to vector<8x128xf32>
    %154 = arith.addf %153, %6 : vector<8x128xf32>
    %155 = arith.mulf %143, %154 : vector<8x128xf32>
    %156 = arith.addf %152, %155 : vector<8x128xf32>
    %157 = math.tanh %156 : vector<8x128xf32>
    %cst_35 = arith.constant 1.000000e+00 : f32
    %158 = vector.broadcast %cst_35 : f32 to vector<8x128xf32>
    %159 = arith.subf %158, %151 : vector<8x128xf32>
    %160 = arith.mulf %159, %157 : vector<8x128xf32>
    %161 = arith.mulf %151, %131 : vector<8x128xf32>
    %162 = arith.addf %160, %161 : vector<8x128xf32>
    %c5_i32 = arith.constant 5 : i32
    %163 = arith.index_cast %c5_i32 : i32 to index
    %c0_36 = arith.constant 0 : index
    %c0_37 = arith.constant 0 : index
    %164 = vector.load %arg2[%163, %c0_36, %c0_37] : memref<8x8x384xf32, #tpu.memory_space<vmem>>, vector<1x8x384xf32>
    %165 = vector.shape_cast %164 : vector<1x8x384xf32> to vector<8x384xf32>
    %cst_38 = arith.constant dense<0.000000e+00> : vector<8x384xf32>
    %166 = tpu.matmul %162, %3, %cst_38 {dimension_numbers = #tpu.dot_dimension_numbers<[1], [0], [0], [1], [0, 0, 1, 1], [], []>} : vector<8x128xf32>, vector<128x384xf32>, vector<8x384xf32> -> vector<8x384xf32>
    %167 = vector.extract_strided_slice %165 {offsets = [0, 0], sizes = [8, 128], strides = [1, 1]} : vector<8x384xf32> to vector<8x128xf32>
    %168 = vector.extract_strided_slice %166 {offsets = [0, 0], sizes = [8, 128], strides = [1, 1]} : vector<8x384xf32> to vector<8x128xf32>
    %169 = arith.addf %167, %168 : vector<8x128xf32>
    %170 = arith.negf %169 : vector<8x128xf32>
    %171 = math.exp %170 : vector<8x128xf32>
    %cst_39 = arith.constant 1.000000e+00 : f32
    %172 = vector.broadcast %cst_39 : f32 to vector<8x128xf32>
    %173 = arith.addf %172, %171 : vector<8x128xf32>
    %174 = arith.divf %172, %173 : vector<8x128xf32>
    %175 = vector.extract_strided_slice %165 {offsets = [0, 128], sizes = [8, 128], strides = [1, 1]} : vector<8x384xf32> to vector<8x128xf32>
    %176 = vector.extract_strided_slice %166 {offsets = [0, 128], sizes = [8, 128], strides = [1, 1]} : vector<8x384xf32> to vector<8x128xf32>
    %177 = arith.addf %175, %176 : vector<8x128xf32>
    %178 = arith.negf %177 : vector<8x128xf32>
    %179 = math.exp %178 : vector<8x128xf32>
    %cst_40 = arith.constant 1.000000e+00 : f32
    %180 = vector.broadcast %cst_40 : f32 to vector<8x128xf32>
    %181 = arith.addf %180, %179 : vector<8x128xf32>
    %182 = arith.divf %180, %181 : vector<8x128xf32>
    %183 = vector.extract_strided_slice %165 {offsets = [0, 256], sizes = [8, 128], strides = [1, 1]} : vector<8x384xf32> to vector<8x128xf32>
    %184 = vector.extract_strided_slice %166 {offsets = [0, 256], sizes = [8, 128], strides = [1, 1]} : vector<8x384xf32> to vector<8x128xf32>
    %185 = arith.addf %184, %6 : vector<8x128xf32>
    %186 = arith.mulf %174, %185 : vector<8x128xf32>
    %187 = arith.addf %183, %186 : vector<8x128xf32>
    %188 = math.tanh %187 : vector<8x128xf32>
    %cst_41 = arith.constant 1.000000e+00 : f32
    %189 = vector.broadcast %cst_41 : f32 to vector<8x128xf32>
    %190 = arith.subf %189, %182 : vector<8x128xf32>
    %191 = arith.mulf %190, %188 : vector<8x128xf32>
    %192 = arith.mulf %182, %162 : vector<8x128xf32>
    %193 = arith.addf %191, %192 : vector<8x128xf32>
    %c6_i32 = arith.constant 6 : i32
    %194 = arith.index_cast %c6_i32 : i32 to index
    %c0_42 = arith.constant 0 : index
    %c0_43 = arith.constant 0 : index
    %195 = vector.load %arg2[%194, %c0_42, %c0_43] : memref<8x8x384xf32, #tpu.memory_space<vmem>>, vector<1x8x384xf32>
    %196 = vector.shape_cast %195 : vector<1x8x384xf32> to vector<8x384xf32>
    %cst_44 = arith.constant dense<0.000000e+00> : vector<8x384xf32>
    %197 = tpu.matmul %193, %3, %cst_44 {dimension_numbers = #tpu.dot_dimension_numbers<[1], [0], [0], [1], [0, 0, 1, 1], [], []>} : vector<8x128xf32>, vector<128x384xf32>, vector<8x384xf32> -> vector<8x384xf32>
    %198 = vector.extract_strided_slice %196 {offsets = [0, 0], sizes = [8, 128], strides = [1, 1]} : vector<8x384xf32> to vector<8x128xf32>
    %199 = vector.extract_strided_slice %197 {offsets = [0, 0], sizes = [8, 128], strides = [1, 1]} : vector<8x384xf32> to vector<8x128xf32>
    %200 = arith.addf %198, %199 : vector<8x128xf32>
    %201 = arith.negf %200 : vector<8x128xf32>
    %202 = math.exp %201 : vector<8x128xf32>
    %cst_45 = arith.constant 1.000000e+00 : f32
    %203 = vector.broadcast %cst_45 : f32 to vector<8x128xf32>
    %204 = arith.addf %203, %202 : vector<8x128xf32>
    %205 = arith.divf %203, %204 : vector<8x128xf32>
    %206 = vector.extract_strided_slice %196 {offsets = [0, 128], sizes = [8, 128], strides = [1, 1]} : vector<8x384xf32> to vector<8x128xf32>
    %207 = vector.extract_strided_slice %197 {offsets = [0, 128], sizes = [8, 128], strides = [1, 1]} : vector<8x384xf32> to vector<8x128xf32>
    %208 = arith.addf %206, %207 : vector<8x128xf32>
    %209 = arith.negf %208 : vector<8x128xf32>
    %210 = math.exp %209 : vector<8x128xf32>
    %cst_46 = arith.constant 1.000000e+00 : f32
    %211 = vector.broadcast %cst_46 : f32 to vector<8x128xf32>
    %212 = arith.addf %211, %210 : vector<8x128xf32>
    %213 = arith.divf %211, %212 : vector<8x128xf32>
    %214 = vector.extract_strided_slice %196 {offsets = [0, 256], sizes = [8, 128], strides = [1, 1]} : vector<8x384xf32> to vector<8x128xf32>
    %215 = vector.extract_strided_slice %197 {offsets = [0, 256], sizes = [8, 128], strides = [1, 1]} : vector<8x384xf32> to vector<8x128xf32>
    %216 = arith.addf %215, %6 : vector<8x128xf32>
    %217 = arith.mulf %205, %216 : vector<8x128xf32>
    %218 = arith.addf %214, %217 : vector<8x128xf32>
    %219 = math.tanh %218 : vector<8x128xf32>
    %cst_47 = arith.constant 1.000000e+00 : f32
    %220 = vector.broadcast %cst_47 : f32 to vector<8x128xf32>
    %221 = arith.subf %220, %213 : vector<8x128xf32>
    %222 = arith.mulf %221, %219 : vector<8x128xf32>
    %223 = arith.mulf %213, %193 : vector<8x128xf32>
    %224 = arith.addf %222, %223 : vector<8x128xf32>
    %c7_i32 = arith.constant 7 : i32
    %225 = arith.index_cast %c7_i32 : i32 to index
    %c0_48 = arith.constant 0 : index
    %c0_49 = arith.constant 0 : index
    %226 = vector.load %arg2[%225, %c0_48, %c0_49] : memref<8x8x384xf32, #tpu.memory_space<vmem>>, vector<1x8x384xf32>
    %227 = vector.shape_cast %226 : vector<1x8x384xf32> to vector<8x384xf32>
    %cst_50 = arith.constant dense<0.000000e+00> : vector<8x384xf32>
    %228 = tpu.matmul %224, %3, %cst_50 {dimension_numbers = #tpu.dot_dimension_numbers<[1], [0], [0], [1], [0, 0, 1, 1], [], []>} : vector<8x128xf32>, vector<128x384xf32>, vector<8x384xf32> -> vector<8x384xf32>
    %229 = vector.extract_strided_slice %227 {offsets = [0, 0], sizes = [8, 128], strides = [1, 1]} : vector<8x384xf32> to vector<8x128xf32>
    %230 = vector.extract_strided_slice %228 {offsets = [0, 0], sizes = [8, 128], strides = [1, 1]} : vector<8x384xf32> to vector<8x128xf32>
    %231 = arith.addf %229, %230 : vector<8x128xf32>
    %232 = arith.negf %231 : vector<8x128xf32>
    %233 = math.exp %232 : vector<8x128xf32>
    %cst_51 = arith.constant 1.000000e+00 : f32
    %234 = vector.broadcast %cst_51 : f32 to vector<8x128xf32>
    %235 = arith.addf %234, %233 : vector<8x128xf32>
    %236 = arith.divf %234, %235 : vector<8x128xf32>
    %237 = vector.extract_strided_slice %227 {offsets = [0, 128], sizes = [8, 128], strides = [1, 1]} : vector<8x384xf32> to vector<8x128xf32>
    %238 = vector.extract_strided_slice %228 {offsets = [0, 128], sizes = [8, 128], strides = [1, 1]} : vector<8x384xf32> to vector<8x128xf32>
    %239 = arith.addf %237, %238 : vector<8x128xf32>
    %240 = arith.negf %239 : vector<8x128xf32>
    %241 = math.exp %240 : vector<8x128xf32>
    %cst_52 = arith.constant 1.000000e+00 : f32
    %242 = vector.broadcast %cst_52 : f32 to vector<8x128xf32>
    %243 = arith.addf %242, %241 : vector<8x128xf32>
    %244 = arith.divf %242, %243 : vector<8x128xf32>
    %245 = vector.extract_strided_slice %227 {offsets = [0, 256], sizes = [8, 128], strides = [1, 1]} : vector<8x384xf32> to vector<8x128xf32>
    %246 = vector.extract_strided_slice %228 {offsets = [0, 256], sizes = [8, 128], strides = [1, 1]} : vector<8x384xf32> to vector<8x128xf32>
    %247 = arith.addf %246, %6 : vector<8x128xf32>
    %248 = arith.mulf %236, %247 : vector<8x128xf32>
    %249 = arith.addf %245, %248 : vector<8x128xf32>
    %250 = math.tanh %249 : vector<8x128xf32>
    %cst_53 = arith.constant 1.000000e+00 : f32
    %251 = vector.broadcast %cst_53 : f32 to vector<8x128xf32>
    %252 = arith.subf %251, %244 : vector<8x128xf32>
    %253 = arith.mulf %252, %250 : vector<8x128xf32>
    %254 = arith.mulf %244, %224 : vector<8x128xf32>
    %255 = arith.addf %253, %254 : vector<8x128xf32>
    %c8_i32 = arith.constant 8 : i32
    %c0_54 = arith.constant 0 : index
    %c0_55 = arith.constant 0 : index
    %256 = vector.load %arg8[%c0_54, %c0_55] : memref<8x128xf32, #tpu.memory_space<vmem>>, vector<8x128xf32>
    tpu.vector_store %arg8[%c0_54, %c0_55], %255 {strides = array<i32>} : memref<8x128xf32, #tpu.memory_space<vmem>>, vector<8x128xf32>,
    %c0_56 = arith.constant 0 : index
    %c0_57 = arith.constant 0 : index
    %257 = vector.load %arg5[%c0_56, %c0_57] : memref<128x3xf32, #tpu.memory_space<vmem>>, vector<128x3xf32>
    %cst_58 = arith.constant dense<0.000000e+00> : vector<8x3xf32>
    %258 = tpu.matmul %255, %257, %cst_58 {dimension_numbers = #tpu.dot_dimension_numbers<[1], [0], [0], [1], [0, 0, 1, 1], [], []>} : vector<8x128xf32>, vector<128x3xf32>, vector<8x3xf32> -> vector<8x3xf32>
    %c0_59 = arith.constant 0 : index
    %c0_60 = arith.constant 0 : index
    %259 = vector.load %arg6[%c0_59, %c0_60] : memref<1x3xf32, #tpu.memory_space<vmem>>, vector<1x3xf32>
    %260 = vector.broadcast %259 : vector<1x3xf32> to vector<8x3xf32>
    %261 = arith.addf %258, %260 : vector<8x3xf32>
    %c0_61 = arith.constant 0 : index
    %c0_62 = arith.constant 0 : index
    %262 = vector.load %arg7[%c0_61, %c0_62] : memref<8x3xf32, #tpu.memory_space<vmem>>, vector<8x3xf32>
    tpu.vector_store %arg7[%c0_61, %c0_62], %261 {strides = array<i32>} : memref<8x3xf32, #tpu.memory_space<vmem>>, vector<8x3xf32>,
    return
  }
  func.func @transform_0(%arg0: i32, %arg1: i32) -> (i32, i32, i32) {
    %c0_i32 = arith.constant 0 : i32
    %c0_i32_0 = arith.constant 0 : i32
    return %arg1, %arg0, %c0_i32 : i32, i32, i32
  }
  func.func @transform_1(%arg0: i32, %arg1: i32) -> (i32, i32) {
    %c0_i32 = arith.constant 0 : i32
    %c0_i32_0 = arith.constant 0 : i32
    %c0_i32_1 = arith.constant 0 : i32
    return %c0_i32, %c0_i32_0 : i32, i32
  }
  func.func @transform_2(%arg0: i32, %arg1: i32) -> (i32, i32) {
    %c0_i32 = arith.constant 0 : i32
    %c0_i32_0 = arith.constant 0 : i32
    %c0_i32_1 = arith.constant 0 : i32
    return %c0_i32, %c0_i32_0 : i32, i32
  }
  func.func @transform_3(%arg0: i32, %arg1: i32) -> (i32, i32) {
    %c0_i32 = arith.constant 0 : i32
    %c0_i32_0 = arith.constant 0 : i32
    %c0_i32_1 = arith.constant 0 : i32
    return %c0_i32, %c0_i32_0 : i32, i32
  }
  func.func @transform_4(%arg0: i32, %arg1: i32) -> (i32, i32) {
    %c0_i32 = arith.constant 0 : i32
    %c0_i32_0 = arith.constant 0 : i32
    %c0_i32_1 = arith.constant 0 : i32
    return %c0_i32, %c0_i32_0 : i32, i32
  }
  func.func @transform_5(%arg0: i32, %arg1: i32) -> (i32, i32) {
    %c0_i32 = arith.constant 0 : i32
    %c0_i32_0 = arith.constant 0 : i32
    return %arg0, %c0_i32 : i32, i32
  }
}

</mosaic_0001>

<bundles_post_ra>
// kernel: tpu_custom_call.1
= control target key start
LH: loop header
LB: loop body
LE: loop exit
PB: predicated region body
PF: predicated region fallthrough
CT: control target
= control target key end

     0   :  { %10 = vsyncpa [#allocation4], 0  ;;  %s3108_s0 = inlined_call_operand.hbm [shape: f32[8,8,384], index: 0, kind: input, shape index: {}]   ;;  %s3109_s1 = inlined_call_operand.hbm [shape: f32[128,384], index: 1, kind: input, shape index: {}]   ;;  %s3110_s2 = inlined_call_operand.vmem [shape: f32[1,128], index: 2, kind: input, shape index: {}]   ;;  %s3111_s3 = inlined_call_operand.vmem [shape: f32[128,3], index: 3, kind: input, shape index: {}]   ;;  %s3112_s4 = inlined_call_operand.vmem [shape: f32[1,3], index: 4, kind: input, shape index: {}]   ;;  %s3113_s5 = inlined_call_operand.vmem [shape: f32[8,3], index: 5, kind: output, shape index: {}]  }
   0x1   :  { %11 = vsyncpa [#allocation6], 0  ;;  %s2211_s18 = smov [#allocation3]  }
   0x2   :  { %s17_s19 = sshll.u32 %s2211_s18, 4  ;;  %s18_s19 = int_to_ptr.vmem [resolvable:$true] %s17_s19 }
   0x3   :  { %s2175_s20 = scalar_lea.vmem %s18_s19, 3072  ;;  %p2180_p1 = scmp.lt.s32.totalorder %s18_s19, %s18_s19 }
   0x4   :  { %p2176_p0 = scmp.ne.s32.totalorder %s18_s19, %s2175_s20  ;;  %p2181_p2 = scmp.lt.s32.totalorder %s2175_s20, %s2175_s20 }
   0x6   :  { %p2182_p3 = por %p2181_p2, %p2180_p1 }
   0x8   :  { %p2183_p4 = pnand %p2182_p3, %p2176_p0 }
   0xa   :  { %2186 = shalt.err (!%p2183_p4)
}
   0xb   :  { %s2212_s21 = smov 384   ;;  %s2213_s22 = smov 24  }
   0xc   :  { %23 = dma.hbm_to_vmem [thread:$0]  %s3108_s0, 3072, %s18_s19, [#allocation4], %s2212_s21, %s2212_s21, %s2213_s22  }
   0xd   :  { %s2214_s25 = smov [#allocation5]  }
   0xe   :  { %s29_s26 = sshll.u32 %s2214_s25, 4  ;;  %s30_s26 = int_to_ptr.vmem [resolvable:$true] %s29_s26 }
   0xf   :  { %s2195_s27 = scalar_lea.vmem %s30_s26, 6144  ;;  %p2200_p6 = scmp.lt.s32.totalorder %s30_s26, %s30_s26 }
  0x10   :  { %p2196_p5 = scmp.ne.s32.totalorder %s30_s26, %s2195_s27  ;;  %p2201_p7 = scmp.lt.s32.totalorder %s2195_s27, %s2195_s27 }
  0x12   :  { %p2202_p8 = por %p2201_p7, %p2200_p6 }
  0x14   :  { %p2203_p9 = pnand %p2202_p8, %p2196_p5 }
  0x16   :  { %2206 = shalt.err (!%p2203_p9)
}
  0x17   :  { %35 = dma.hbm_to_vmem [thread:$0]  %s3109_s1, 6144, %s30_s26, [#allocation6], %s2212_s21, %s2212_s21, %s2213_s22  }
  0x18   :  { %2207 = dma.done.wait [#allocation4], 3072  }
  0x19   :  { %2208 = vsyncadd [#allocation4], 4294964224 }
  0x1a   :  { %2209 = dma.done.wait [#allocation6], 6144  }
  0x1b   :  { %2210 = vsyncadd [#allocation6], 4294961152  ;;  %v3118_v0 = vmov 0.0   ;;  %vm2216_vm0 = vmmov 0   ;;  %v2257_v1 = vld [vmem:[#allocation5 + $0x170] sm:$0xff]  ;;  %v2259_v2 = vld [vmem:[#allocation5 + $0x168] sm:$0xff] }
  0x1c   :  { %1717 = vmatprep.subr.mxu1 %v3118_v0  ;;  %176 = vmatprep.mubr.f32.mxu0 %v3118_v0  ;;  %3130 = vst [vmem:[#allocation9_spill] sm:$0xff] %v2257_v1  ;;  %v2261_v3 = vld [vmem:[#allocation5 + $0x158] sm:$0xff]  ;;  %v2264_v4 = vld [vmem:[#allocation5 + $0x150] sm:$0xff]  ;;  %v2267_v5 = vld [vmem:[#allocation5 + $0x140] sm:$0xff]  ;;  %vm1538_vm1 = vcmask 23552  }
  0x1d   :  { %1749 = vmatprep.mubr.msk.f32.mxu1 %vm2216_vm0, %v3118_v0  ;;  %112 = vmatprep.subr.mxu0 %v2257_v1  ;;  %v2270_v6 = vld [vmem:[#allocation5 + $0x138] sm:$0xff]  ;;  %v2273_v7 = vld [vmem:[#allocation5 + $0x128] sm:$0xff]  ;;  %v2276_v8 = vld [vmem:[#allocation5 + $0x120] sm:$0xff] }
  0x1e   :  { %113 = vmatpush1.msra.mxu0 %v2259_v2  ;;  %v2279_v9 = vld [vmem:[#allocation5 + $0x110] sm:$0xff]  ;;  %v2282_v10 = vld [vmem:[#allocation5 + $0x108] sm:$0xff]  ;;  %v2285_v11 = vld [vmem:[#allocation5 + $0xf8] sm:$0xff] }
  0x1f   :  { %114 = vmatprep.subr.mxu0 %v2261_v3  ;;  %v2288_v12 = vld [vmem:[#allocation5 + $0xf0] sm:$0xff]  ;;  %v2291_v13 = vld [vmem:[#allocation5 + $0xe0] sm:$0xff]  ;;  %v2293_v14 = vld [vmem:[#allocation5 + $0x178] sm:$0xff] }
  0x20   :  { %115 = vmatpush1.msra.mxu0 %v2264_v4  ;;  %v2296_v15 = vld [vmem:[#allocation5 + $0xd8] sm:$0xff]  ;;  %1718 = vmatpush3.msra.mxu1 %v2293_v14  ;;  %v2299_v16 = vld [vmem:[#allocation5 + $0x160] sm:$0xff]  ;;  %v2302_v17 = vld [vmem:[#allocation5 + $0xc8] sm:$0xff] }
  0x21   :  { %116 = vmatprep.subr.mxu0 %v2267_v5  ;;  %1719 = vmatprep.subr.mxu1 %v3118_v0  ;;  %v2305_v18 = vld [vmem:[#allocation5 + $0x148] sm:$0xff]  ;;  %v2308_v19 = vld [vmem:[#allocation5 + $0xc0] sm:$0xff]  ;;  %v2312_v20 = vld [vmem:[#allocation5 + $0xb0] sm:$0xff] }
  0x22   :  { %117 = vmatpush1.msra.mxu0 %v2270_v6  ;;  %1720 = vmatpush3.msra.mxu1 %v2299_v16  ;;  %v2315_v21 = vld [vmem:[#allocation5 + $0x130] sm:$0xff]  ;;  %v2318_v22 = vld [vmem:[#allocation5 + $0xa8] sm:$0xff]  ;;  %v2322_v23 = vld [vmem:[#allocation5 + $0x98] sm:$0xff] }
  0x23   :  { %118 = vmatprep.subr.mxu0 %v2273_v7  ;;  %1721 = vmatprep.subr.mxu1 %v3118_v0  ;;  %v2325_v24 = vld [vmem:[#allocation5 + $0x118] sm:$0xff]  ;;  %v2328_v25 = vld [vmem:[#allocation5 + $0x90] sm:$0xff]  ;;  %v2332_v26 = vld [vmem:[#allocation5 + $0x80] sm:$0xff] }
  0x24   :  { %119 = vmatpush1.msra.mxu0 %v2276_v8  ;;  %1722 = vmatpush3.msra.mxu1 %v2305_v18  ;;  %v2335_v27 = vld [vmem:[#allocation5 + $0x100] sm:$0xff]  ;;  %v2338_v28 = vld [vmem:[#allocation5 + $0x78] sm:$0xff]  ;;  %v2342_v29 = vld [vmem:[#allocation5 + $0x68] sm:$0xff] }
  0x25   :  { %120 = vmatprep.subr.mxu0 %v2279_v9  ;;  %1723 = vmatprep.subr.mxu1 %v3118_v0  ;;  %v2345_v30 = vld [vmem:[#allocation5 + $0xe8] sm:$0xff]  ;;  %v2348_v31 = vld [vmem:[#allocation5 + $0x60] sm:$0xff]  ;;  %v2352_v32 = vld [vmem:[#allocation5 + $0x50] sm:$0xff] }
  0x26   :  { %121 = vmatpush1.msra.mxu0 %v2282_v10  ;;  %1724 = vmatpush3.msra.mxu1 %v2315_v21  ;;  %v2355_v33 = vld [vmem:[#allocation5 + $0xd0] sm:$0xff]  ;;  %v2358_v34 = vld [vmem:[#allocation5 + $0x48] sm:$0xff]  ;;  %v2362_v35 = vld [vmem:[#allocation5 + $0x38] sm:$0xff] }
  0x27   :  { %122 = vmatprep.subr.mxu0 %v2285_v11  ;;  %1725 = vmatprep.subr.mxu1 %v3118_v0  ;;  %v2365_v36 = vld [vmem:[#allocation5 + $0xb8] sm:$0xff]  ;;  %v2368_v37 = vld [vmem:[#allocation5 + $0x30] sm:$0xff]  ;;  %v2372_v38 = vld [vmem:[#allocation5 + $0x20] sm:$0xff] }
  0x28   :  { %123 = vmatpush1.msra.mxu0 %v2288_v12  ;;  %1726 = vmatpush3.msra.mxu1 %v2325_v24  ;;  %v2375_v39 = vld [vmem:[#allocation5 + $0xa0] sm:$0xff]  ;;  %v2378_v40 = vld [vmem:[#allocation5 + $0x18] sm:$0xff]  ;;  %v2382_v41 = vld [vmem:[#allocation5 + $0x8] sm:$0xff] }
  0x29   :  { %124 = vmatprep.subr.mxu0 %v2291_v13  ;;  %1727 = vmatprep.subr.mxu1 %v3118_v0  ;;  %3131 = vst [vmem:[#allocation10_spill] sm:$0xff] %v2382_v41  ;;  %v2385_v42 = vld [vmem:[#allocation5 + $0x88] sm:$0xff]  ;;  %v2388_v43 = vld [vmem:[#allocation5] sm:$0xff]  ;;  %v2393_v44 = vld [vmem:[#allocation5 + $0x70] sm:$0xff] }
  0x2a   :  { %125 = vmatpush1.msra.mxu0 %v2296_v15  ;;  %1728 = vmatpush3.msra.mxu1 %v2335_v27  ;;  %3132 = vst [vmem:[#allocation11_spill] sm:$0xff] %v2388_v43  ;;  %v2399_v45 = vld [vmem:[#allocation5 + $0x58] sm:$0xff]  ;;  %v2404_v46 = vld [vmem:[#allocation5 + $0x40] sm:$0xff]  ;;  %v2410_v47 = vld [vmem:[#allocation5 + $0x28] sm:$0xff] }
  0x2b   :  { %126 = vmatprep.subr.mxu0 %v2302_v17  ;;  %1729 = vmatprep.subr.mxu1 %v3118_v0  ;;  %3133 = vst [vmem:[#allocation12_spill] sm:$0xff] %v2410_v47  ;;  %v2416_v48 = vld [vmem:[#allocation5 + $0x10] sm:$0xff]  ;;  %v109_v49 = vld [vmem:[#allocation3] sm:$0xff]  ;;  %v110_v53 = vld [vmem:[#allocation3 + $0x8] sm:$0xff] }
  0x2c   :  { %127 = vmatpush1.msra.mxu0 %v2308_v19  ;;  %1730 = vmatpush3.msra.mxu1 %v2345_v30  ;;  %3134 = vst [vmem:[#allocation13_spill] sm:$0xff] %v2416_v48  ;;  %v2490_v62 = vld [vmem:[%s3110_s2] ss:$0 sm:$0xff] }
  0x2d   :  { %128 = vmatprep.subr.mxu0 %v2312_v20  ;;  %1731 = vmatprep.subr.mxu1 %v3118_v0 }
  0x2e   :  { %129 = vmatpush1.msra.mxu0 %v2318_v22  ;;  %1732 = vmatpush3.msra.mxu1 %v2355_v33 }
  0x2f   :  { %130 = vmatprep.subr.mxu0 %v2322_v23  ;;  %1733 = vmatprep.subr.mxu1 %v3118_v0 }
  0x30   :  { %131 = vmatpush1.msra.mxu0 %v2328_v25  ;;  %1734 = vmatpush3.msra.mxu1 %v2365_v36 }
  0x31   :  { %132 = vmatprep.subr.mxu0 %v2332_v26  ;;  %1735 = vmatprep.subr.mxu1 %v3118_v0 }
  0x32   :  { %133 = vmatpush1.msra.mxu0 %v2338_v28  ;;  %1736 = vmatpush3.msra.mxu1 %v2375_v39 }
  0x33   :  { %134 = vmatprep.subr.mxu0 %v2342_v29  ;;  %1737 = vmatprep.subr.mxu1 %v3118_v0 }
  0x34   :  { %135 = vmatpush1.msra.mxu0 %v2348_v31  ;;  %1738 = vmatpush3.msra.mxu1 %v2385_v42 }
  0x35   :  { %136 = vmatprep.subr.mxu0 %v2352_v32  ;;  %1739 = vmatprep.subr.mxu1 %v3118_v0 }
  0x36   :  { %137 = vmatpush1.msra.mxu0 %v2358_v34  ;;  %1740 = vmatpush3.msra.mxu1 %v2393_v44 }
  0x37   :  { %138 = vmatprep.subr.mxu0 %v2362_v35  ;;  %1741 = vmatprep.subr.mxu1 %v3118_v0 }
  0x38   :  { %139 = vmatpush1.msra.mxu0 %v2368_v37  ;;  %1742 = vmatpush3.msra.mxu1 %v2399_v45 }
  0x39   :  { %140 = vmatprep.subr.mxu0 %v2372_v38  ;;  %1743 = vmatprep.subr.mxu1 %v3118_v0 }
  0x3a   :  { %141 = vmatpush1.msra.mxu0 %v2378_v40  ;;  %1744 = vmatpush3.msra.mxu1 %v2404_v46 }
  0x3b   :  { %142 = vmatprep.subr.mxu0 %v2382_v41  ;;  %1745 = vmatprep.subr.mxu1 %v3118_v0 }
  0x3c   :  { %143 = vmatpush1.msra.mxu0 %v2388_v43  ;;  %1746 = vmatpush3.msra.mxu1 %v2410_v47 }
  0x3d   :  { %177 = vmatmul.mubr.f32.vlgmr.msra.gmra.mxu0 %v3118_v0  ;;  %279 = vmatprep.subr.mxu0 %v2257_v1 }
  0x3e   :  { %280 = vmatpush1.msra.mxu0 %v2259_v2  ;;  %1747 = vmatprep.subr.mxu1 %v3118_v0 }
  0x3f   :  { %281 = vmatprep.subr.mxu0 %v2261_v3  ;;  %1748 = vmatpush3.msra.mxu1 %v2416_v48 }
  0x40   :  { %282 = vmatpush1.msra.mxu0 %v2264_v4  ;;  %1750 = vmatmul.mubr.f32.vlgmr.msra.gmra.mxu1 %v3118_v0 }
  0x41   :  { %283 = vmatprep.subr.mxu0 %v2267_v5  ;;  %1752 = vmatprep.subr.mxu1 %v3118_v0 }
  0x42   :  { %284 = vmatpush1.msra.mxu0 %v2270_v6  ;;  %1753 = vmatpush3.msra.mxu1 %v2293_v14 }
  0x43   :  { %285 = vmatprep.subr.mxu0 %v2273_v7  ;;  %1754 = vmatprep.subr.mxu1 %v3118_v0 }
  0x44   :  { %286 = vmatpush1.msra.mxu0 %v2276_v8  ;;  %1755 = vmatpush3.msra.mxu1 %v2299_v16 }
  0x45   :  { %287 = vmatprep.subr.mxu0 %v2279_v9  ;;  %1756 = vmatprep.subr.mxu1 %v3118_v0 }
  0x46   :  { %288 = vmatpush1.msra.mxu0 %v2282_v10  ;;  %1757 = vmatpush3.msra.mxu1 %v2305_v18 }
  0x47   :  { %289 = vmatprep.subr.mxu0 %v2285_v11  ;;  %1758 = vmatprep.subr.mxu1 %v3118_v0 }
  0x48   :  { %290 = vmatpush1.msra.mxu0 %v2288_v12  ;;  %1759 = vmatpush3.msra.mxu1 %v2315_v21 }
  0x49   :  { %291 = vmatprep.subr.mxu0 %v2291_v13  ;;  %1760 = vmatprep.subr.mxu1 %v3118_v0 }
  0x4a   :  { %292 = vmatpush1.msra.mxu0 %v2296_v15  ;;  %1761 = vmatpush3.msra.mxu1 %v2325_v24 }
  0x4b   :  { %293 = vmatprep.subr.mxu0 %v2302_v17  ;;  %1762 = vmatprep.subr.mxu1 %v3118_v0 }
  0x4c   :  { %294 = vmatpush1.msra.mxu0 %v2308_v19  ;;  %1763 = vmatpush3.msra.mxu1 %v2335_v27 }
  0x4d   :  { %295 = vmatprep.subr.mxu0 %v2312_v20  ;;  %1764 = vmatprep.subr.mxu1 %v3118_v0 }
  0x4e   :  { %296 = vmatpush1.msra.mxu0 %v2318_v22  ;;  %1765 = vmatpush3.msra.mxu1 %v2345_v30 }
  0x4f   :  { %297 = vmatprep.subr.mxu0 %v2322_v23  ;;  %1766 = vmatprep.subr.mxu1 %v3118_v0 }
  0x50   :  { %298 = vmatpush1.msra.mxu0 %v2328_v25  ;;  %1767 = vmatpush3.msra.mxu1 %v2355_v33 }
  0x51   :  { %299 = vmatprep.subr.mxu0 %v2332_v26  ;;  %1768 = vmatprep.subr.mxu1 %v3118_v0 }
  0x52   :  { %300 = vmatpush1.msra.mxu0 %v2338_v28  ;;  %1769 = vmatpush3.msra.mxu1 %v2365_v36 }
  0x53   :  { %301 = vmatprep.subr.mxu0 %v2342_v29  ;;  %1770 = vmatprep.subr.mxu1 %v3118_v0 }
  0x54   :  { %302 = vmatpush1.msra.mxu0 %v2348_v31  ;;  %1771 = vmatpush3.msra.mxu1 %v2375_v39 }
  0x55   :  { %303 = vmatprep.subr.mxu0 %v2352_v32  ;;  %1772 = vmatprep.subr.mxu1 %v3118_v0 }
  0x56   :  { %304 = vmatpush1.msra.mxu0 %v2358_v34  ;;  %1773 = vmatpush3.msra.mxu1 %v2385_v42 }
  0x57   :  { %305 = vmatprep.subr.mxu0 %v2362_v35  ;;  %1774 = vmatprep.subr.mxu1 %v3118_v0 }
  0x58   :  { %306 = vmatpush1.msra.mxu0 %v2368_v37  ;;  %1775 = vmatpush3.msra.mxu1 %v2393_v44 }
  0x59   :  { %307 = vmatprep.subr.mxu0 %v2372_v38  ;;  %1776 = vmatprep.subr.mxu1 %v3118_v0 }
  0x5a   :  { %308 = vmatpush1.msra.mxu0 %v2378_v40  ;;  %1777 = vmatpush3.msra.mxu1 %v2399_v45 }
  0x5b   :  { %309 = vmatprep.subr.mxu0 %v2382_v41  ;;  %343 = vmatprep.mubr.f32.mxu0 %v3118_v0 }
  0x5c   :  { %310 = vmatpush1.msra.mxu0 %v2388_v43  ;;  %1778 = vmatprep.subr.mxu1 %v3118_v0 }
  0x5d   :  { %1784 = vmatprep.mubr.msk.f32.mxu1 %vm2216_vm0, %v3118_v0  ;;  %1779 = vmatpush3.msra.mxu1 %v2404_v46 }
  0x5e   :  { %446 = vmatprep.subr.mxu0 %v2257_v1  ;;  %1780 = vmatprep.subr.mxu1 %v3118_v0 }
  0x5f   :  { %1781 = vmatpush3.msra.mxu1 %v2410_v47 }
  0x60   :  { %1782 = vmatprep.subr.mxu1 %v3118_v0 }
  0x61   :  { %1783 = vmatpush3.msra.mxu1 %v2416_v48 }
  0x62   :  { %1787 = vmatprep.subr.mxu1 %v3118_v0 }
  0xfd   :  { %v178_v50 = vpop.f32.mrf.mxu0 }
  0xfe   :  { %v253_v51 = vadd.f32 %v178_v50, %v109_v49 }
  0xff   :  { %v180_v54 = vpop.f32.mrf.mxu0 }
 0x100   :  { %v1547_v52 = vmul.f32 -1.442695, %v253_v51  ;;  %v260_v55 = vadd.f32 %v180_v54, %v110_v53  ;;  %v249_v56 = vpop.f32.mrf.mxu1  ;;  %v111_v51 = vld [vmem:[#allocation3 + $0x10] sm:$0xff] }
 0x101   :  { %v267_v49 = vadd.f32 %v2490_v62, %v249_v56  ;;  %v276_v56 = vld [vmem:[#allocation3 + $0x18] sm:$0xff] }
 0x102   :  { %2038 = vpow2.f32 %v1547_v52  ;;  %v1548_v57 = vmul.f32 -1.442695, %v260_v55  ;;  %v1751_v58 = vpop.f32.mrf.mxu1 }
 0x104   :  { %2040 = vpow2.f32 %v1548_v57 }
 0x10f   :  { %v2039_v59 = vpop.eup %2038 }
 0x110   :  { %v257_v60 = vadd.f32 1.0, %v2039_v59 }
 0x111   :  { %v2041_v61 = vpop.eup %2040 }
 0x112   :  { %2042 = vrcp.f32 %v257_v60  ;;  %v264_v63 = vadd.f32 1.0, %v2041_v61 }
 0x114   :  { %2044 = vrcp.f32 %v264_v63 }
 0x11f   :  { %v2043_v50 = vpop.eup %2042 }
 0x120   :  { %v268_v52 = vmul.f32 %v2043_v50, %v267_v49 }
 0x121   :  { %v2045_v54 = vpop.eup %2044 }
 0x122   :  { %v269_v53 = vadd.f32 %v268_v52, %v111_v51  ;;  %v271_v55 = vsub.f32 1.0, %v2045_v54  ;;  %v273_v59 = vmul.f32 0.0, %v2045_v54  ;;  %v277_v52 = vld [vmem:[#allocation3 + $0x20] sm:$0xff] }
 0x124   :  { %2046 = vtanh.f32 %v269_v53 }
 0x131   :  { %v2047_v57 = vpop.eup %2046 }
 0x132   :  { %v272_v58 = vmul.f32 %v2047_v57, %v271_v55 }
 0x134   :  { %v2493_v60 = vadd.f32 %v273_v59, %v272_v58 }
 0x136   :  { %344 = vmatmul.mubr.f32.vlgmr.msra.gmra.mxu0 %v2493_v60  ;;  %1785 = vmatmul.mubr.f32.vlgmr.msra.gmra.mxu1 %v2493_v60 }
 0x137   :  { %447 = vmatpush1.msra.mxu0 %v2259_v2  ;;  %1788 = vmatpush3.msra.mxu1 %v2293_v14 }
 0x138   :  { %448 = vmatprep.subr.mxu0 %v2261_v3  ;;  %1789 = vmatprep.subr.mxu1 %v3118_v0 }
 0x139   :  { %449 = vmatpush1.msra.mxu0 %v2264_v4  ;;  %1790 = vmatpush3.msra.mxu1 %v2299_v16 }
 0x13a   :  { %450 = vmatprep.subr.mxu0 %v2267_v5  ;;  %1791 = vmatprep.subr.mxu1 %v3118_v0 }
 0x13b   :  { %451 = vmatpush1.msra.mxu0 %v2270_v6  ;;  %1792 = vmatpush3.msra.mxu1 %v2305_v18 }
 0x13c   :  { %452 = vmatprep.subr.mxu0 %v2273_v7  ;;  %1793 = vmatprep.subr.mxu1 %v3118_v0 }
 0x13d   :  { %453 = vmatpush1.msra.mxu0 %v2276_v8  ;;  %1794 = vmatpush3.msra.mxu1 %v2315_v21 }
 0x13e   :  { %454 = vmatprep.subr.mxu0 %v2279_v9  ;;  %1795 = vmatprep.subr.mxu1 %v3118_v0 }
 0x13f   :  { %455 = vmatpush1.msra.mxu0 %v2282_v10  ;;  %1796 = vmatpush3.msra.mxu1 %v2325_v24 }
 0x140   :  { %456 = vmatprep.subr.mxu0 %v2285_v11  ;;  %1797 = vmatprep.subr.mxu1 %v3118_v0 }
 0x141   :  { %457 = vmatpush1.msra.mxu0 %v2288_v12  ;;  %1798 = vmatpush3.msra.mxu1 %v2335_v27 }
 0x142   :  { %458 = vmatprep.subr.mxu0 %v2291_v13  ;;  %1799 = vmatprep.subr.mxu1 %v3118_v0 }
 0x143   :  { %459 = vmatpush1.msra.mxu0 %v2296_v15  ;;  %1800 = vmatpush3.msra.mxu1 %v2345_v30 }
 0x144   :  { %460 = vmatprep.subr.mxu0 %v2302_v17  ;;  %1801 = vmatprep.subr.mxu1 %v3118_v0 }
 0x145   :  { %461 = vmatpush1.msra.mxu0 %v2308_v19  ;;  %1802 = vmatpush3.msra.mxu1 %v2355_v33 }
 0x146   :  { %462 = vmatprep.subr.mxu0 %v2312_v20  ;;  %1803 = vmatprep.subr.mxu1 %v3118_v0 }
 0x147   :  { %463 = vmatpush1.msra.mxu0 %v2318_v22  ;;  %1804 = vmatpush3.msra.mxu1 %v2365_v36 }
 0x148   :  { %464 = vmatprep.subr.mxu0 %v2322_v23  ;;  %1805 = vmatprep.subr.mxu1 %v3118_v0 }
 0x149   :  { %465 = vmatpush1.msra.mxu0 %v2328_v25  ;;  %1806 = vmatpush3.msra.mxu1 %v2375_v39 }
 0x14a   :  { %466 = vmatprep.subr.mxu0 %v2332_v26  ;;  %1807 = vmatprep.subr.mxu1 %v3118_v0 }
 0x14b   :  { %467 = vmatpush1.msra.mxu0 %v2338_v28  ;;  %1808 = vmatpush3.msra.mxu1 %v2385_v42 }
 0x14c   :  { %468 = vmatprep.subr.mxu0 %v2342_v29  ;;  %1809 = vmatprep.subr.mxu1 %v3118_v0 }
 0x14d   :  { %469 = vmatpush1.msra.mxu0 %v2348_v31  ;;  %1810 = vmatpush3.msra.mxu1 %v2393_v44 }
 0x14e   :  { %470 = vmatprep.subr.mxu0 %v2352_v32  ;;  %1811 = vmatprep.subr.mxu1 %v3118_v0 }
 0x14f   :  { %471 = vmatpush1.msra.mxu0 %v2358_v34  ;;  %1812 = vmatpush3.msra.mxu1 %v2399_v45 }
 0x150   :  { %472 = vmatprep.subr.mxu0 %v2362_v35  ;;  %1813 = vmatprep.subr.mxu1 %v3118_v0 }
 0x151   :  { %473 = vmatpush1.msra.mxu0 %v2368_v37  ;;  %1814 = vmatpush3.msra.mxu1 %v2404_v46 }
 0x152   :  { %474 = vmatprep.subr.mxu0 %v2372_v38  ;;  %1815 = vmatprep.subr.mxu1 %v3118_v0 }
 0x153   :  { %475 = vmatpush1.msra.mxu0 %v2378_v40  ;;  %1816 = vmatpush3.msra.mxu1 %v2410_v47 }
 0x154   :  { %476 = vmatprep.subr.mxu0 %v2382_v41  ;;  %1817 = vmatprep.subr.mxu1 %v3118_v0 }
 0x155   :  { %477 = vmatpush1.msra.mxu0 %v2388_v43  ;;  %510 = vmatprep.mubr.f32.mxu0 %v3118_v0  ;;  %v278_v43 = vld [vmem:[#allocation3 + $0x28] sm:$0xff] }
 0x156   :  { %1818 = vmatpush3.msra.mxu1 %v2416_v48  ;;  %1819 = vmatprep.mubr.msk.f32.mxu1 %vm2216_vm0, %v3118_v0 }
 0x157   :  { %613 = vmatprep.subr.mxu0 %v2257_v1  ;;  %1822 = vmatprep.subr.mxu1 %v3118_v0 }
 0x1f6   :  { %v345_v61 = vpop.f32.mrf.mxu0  ;;  %v416_v63 = vpop.f32.mrf.mxu1 }
 0x1f7   :  { %v420_v49 = vadd.f32 %v345_v61, %v276_v56  ;;  %v434_v1 = vadd.f32 %v2490_v62, %v416_v63 }
 0x1f8   :  { %v1786_v50 = vpop.f32.mrf.mxu1  ;;  %v347_v53 = vpop.f32.mrf.mxu0 }
 0x1f9   :  { %v1549_v51 = vmul.f32 -1.442695, %v420_v49  ;;  %v427_v54 = vadd.f32 %v347_v53, %v277_v52 }
 0x1fb   :  { %2048 = vpow2.f32 %v1549_v51  ;;  %v1550_v55 = vmul.f32 -1.442695, %v427_v54 }
 0x1fd   :  { %2050 = vpow2.f32 %v1550_v55 }
 0x208   :  { %v2049_v57 = vpop.eup %2048 }
 0x209   :  { %v424_v58 = vadd.f32 1.0, %v2049_v57 }
 0x20a   :  { %v2051_v59 = vpop.eup %2050 }
 0x20b   :  { %2052 = vrcp.f32 %v424_v58  ;;  %v431_v48 = vadd.f32 1.0, %v2051_v59  ;;  %v444_v59 = vld [vmem:[#allocation3 + $0x38] sm:$0xff] }
 0x20d   :  { %2054 = vrcp.f32 %v431_v48  ;;  %v3139_v48 = vld [vmem:[#allocation9_spill] sm:$0xff] }
 0x218   :  { %v2053_v0 = vpop.eup %2052 }
 0x219   :  { %v435_v41 = vmul.f32 %v2053_v0, %v434_v1  ;;  %v3135_v0 = vmov 0.0   ;;  %v3136_v1 = vld [vmem:[#allocation10_spill] sm:$0xff] }
 0x21a   :  { %v2055_v61 = vpop.eup %2054 }
 0x21b   :  { %v436_v56 = vadd.f32 %v435_v41, %v278_v43  ;;  %v438_v49 = vsub.f32 1.0, %v2055_v61  ;;  %v440_v52 = vmul.f32 %v2055_v61, %v2493_v60  ;;  %v3137_v41 = vld [vmem:[#allocation11_spill] sm:$0xff]  ;;  %v3138_v43 = vld [vmem:[#allocation13_spill] sm:$0xff] }
 0x21c   :  { %v443_v60 = vld [vmem:[#allocation3 + $0x30] sm:$0xff] }
 0x21d   :  { %2056 = vtanh.f32 %v436_v56 }
 0x22a   :  { %v2057_v50 = vpop.eup %2056 }
 0x22b   :  { %v439_v51 = vmul.f32 %v2057_v50, %v438_v49 }
 0x22d   :  { %v2566_v53 = vadd.f32 %v440_v52, %v439_v51 }
 0x22f   :  { %511 = vmatmul.mubr.f32.vlgmr.msra.gmra.mxu0 %v2566_v53  ;;  %1820 = vmatmul.mubr.f32.vlgmr.msra.gmra.mxu1 %v2566_v53 }
 0x230   :  { %614 = vmatpush1.msra.mxu0 %v2259_v2  ;;  %1823 = vmatpush3.msra.mxu1 %v2293_v14 }
 0x231   :  { %615 = vmatprep.subr.mxu0 %v2261_v3  ;;  %1824 = vmatprep.subr.mxu1 %v3135_v0 }
 0x232   :  { %616 = vmatpush1.msra.mxu0 %v2264_v4  ;;  %1825 = vmatpush3.msra.mxu1 %v2299_v16 }
 0x233   :  { %617 = vmatprep.subr.mxu0 %v2267_v5  ;;  %1826 = vmatprep.subr.mxu1 %v3135_v0 }
 0x234   :  { %618 = vmatpush1.msra.mxu0 %v2270_v6  ;;  %1827 = vmatpush3.msra.mxu1 %v2305_v18 }
 0x235   :  { %619 = vmatprep.subr.mxu0 %v2273_v7  ;;  %1828 = vmatprep.subr.mxu1 %v3135_v0 }
 0x236   :  { %620 = vmatpush1.msra.mxu0 %v2276_v8  ;;  %1829 = vmatpush3.msra.mxu1 %v2315_v21 }
 0x237   :  { %621 = vmatprep.subr.mxu0 %v2279_v9  ;;  %1830 = vmatprep.subr.mxu1 %v3135_v0 }
 0x238   :  { %622 = vmatpush1.msra.mxu0 %v2282_v10  ;;  %1831 = vmatpush3.msra.mxu1 %v2325_v24 }
 0x239   :  { %623 = vmatprep.subr.mxu0 %v2285_v11  ;;  %1832 = vmatprep.subr.mxu1 %v3135_v0 }
 0x23a   :  { %624 = vmatpush1.msra.mxu0 %v2288_v12  ;;  %1833 = vmatpush3.msra.mxu1 %v2335_v27 }
 0x23b   :  { %625 = vmatprep.subr.mxu0 %v2291_v13  ;;  %1834 = vmatprep.subr.mxu1 %v3135_v0 }
 0x23c   :  { %626 = vmatpush1.msra.mxu0 %v2296_v15  ;;  %1835 = vmatpush3.msra.mxu1 %v2345_v30 }
 0x23d   :  { %627 = vmatprep.subr.mxu0 %v2302_v17  ;;  %1836 = vmatprep.subr.mxu1 %v3135_v0 }
 0x23e   :  { %628 = vmatpush1.msra.mxu0 %v2308_v19  ;;  %1837 = vmatpush3.msra.mxu1 %v2355_v33 }
 0x23f   :  { %629 = vmatprep.subr.mxu0 %v2312_v20  ;;  %1838 = vmatprep.subr.mxu1 %v3135_v0 }
 0x240   :  { %630 = vmatpush1.msra.mxu0 %v2318_v22  ;;  %1839 = vmatpush3.msra.mxu1 %v2365_v36 }
 0x241   :  { %631 = vmatprep.subr.mxu0 %v2322_v23  ;;  %1840 = vmatprep.subr.mxu1 %v3135_v0 }
 0x242   :  { %632 = vmatpush1.msra.mxu0 %v2328_v25  ;;  %1841 = vmatpush3.msra.mxu1 %v2375_v39 }
 0x243   :  { %633 = vmatprep.subr.mxu0 %v2332_v26  ;;  %1842 = vmatprep.subr.mxu1 %v3135_v0 }
 0x244   :  { %634 = vmatpush1.msra.mxu0 %v2338_v28  ;;  %1843 = vmatpush3.msra.mxu1 %v2385_v42 }
 0x245   :  { %635 = vmatprep.subr.mxu0 %v2342_v29  ;;  %1844 = vmatprep.subr.mxu1 %v3135_v0 }
 0x246   :  { %636 = vmatpush1.msra.mxu0 %v2348_v31  ;;  %1845 = vmatpush3.msra.mxu1 %v2393_v44 }
 0x247   :  { %637 = vmatprep.subr.mxu0 %v2352_v32  ;;  %1846 = vmatprep.subr.mxu1 %v3135_v0 }
 0x248   :  { %638 = vmatpush1.msra.mxu0 %v2358_v34  ;;  %1847 = vmatpush3.msra.mxu1 %v2399_v45 }
 0x249   :  { %639 = vmatprep.subr.mxu0 %v2362_v35  ;;  %1848 = vmatprep.subr.mxu1 %v3135_v0 }
 0x24a   :  { %640 = vmatpush1.msra.mxu0 %v2368_v37  ;;  %1849 = vmatpush3.msra.mxu1 %v2404_v46 }
 0x24b   :  { %641 = vmatprep.subr.mxu0 %v2372_v38  ;;  %1850 = vmatprep.subr.mxu1 %v3135_v0 }
 0x24c   :  { %642 = vmatpush1.msra.mxu0 %v2378_v40  ;;  %1851 = vmatpush3.msra.mxu1 %v2410_v47 }
 0x24d   :  { %643 = vmatprep.subr.mxu0 %v3136_v1  ;;  %1852 = vmatprep.subr.mxu1 %v3135_v0  ;;  %v445_v1 = vld [vmem:[#allocation3 + $0x40] sm:$0xff] }
 0x24e   :  { %644 = vmatpush1.msra.mxu0 %v3137_v41  ;;  %677 = vmatprep.mubr.f32.mxu0 %v3135_v0 }
 0x24f   :  { %1853 = vmatpush3.msra.mxu1 %v3138_v43  ;;  %1854 = vmatprep.mubr.msk.f32.mxu1 %vm2216_vm0, %v3135_v0 }
 0x250   :  { %780 = vmatprep.subr.mxu0 %v3139_v48  ;;  %1857 = vmatprep.subr.mxu1 %v3135_v0 }
 0x2ef   :  { %v512_v63 = vpop.f32.mrf.mxu0  ;;  %v583_v54 = vpop.f32.mrf.mxu1 }
 0x2f0   :  { %v587_v55 = vadd.f32 %v512_v63, %v443_v60  ;;  %v601_v48 = vadd.f32 %v2490_v62, %v583_v54 }
 0x2f1   :  { %v1821_v57 = vpop.f32.mrf.mxu1  ;;  %v514_v56 = vpop.f32.mrf.mxu0 }
 0x2f2   :  { %v1551_v58 = vmul.f32 -1.442695, %v587_v55  ;;  %v594_v61 = vadd.f32 %v514_v56, %v444_v59 }
 0x2f4   :  { %2058 = vpow2.f32 %v1551_v58  ;;  %v1552_v49 = vmul.f32 -1.442695, %v594_v61 }
 0x2f6   :  { %2060 = vpow2.f32 %v1552_v49 }
 0x301   :  { %v2059_v50 = vpop.eup %2058 }
 0x302   :  { %v591_v51 = vadd.f32 1.0, %v2059_v50 }
 0x303   :  { %v2061_v52 = vpop.eup %2060 }
 0x304   :  { %2062 = vrcp.f32 %v591_v51  ;;  %v598_v43 = vadd.f32 1.0, %v2061_v52  ;;  %v611_v52 = vld [vmem:[#allocation3 + $0x50] sm:$0xff] }
 0x306   :  { %2064 = vrcp.f32 %v598_v43  ;;  %v3144_v43 = vld [vmem:[#allocation9_spill] sm:$0xff] }
 0x311   :  { %v2063_v41 = vpop.eup %2062 }
 0x312   :  { %v602_v47 = vmul.f32 %v2063_v41, %v601_v48  ;;  %v3143_v41 = vld [vmem:[#allocation13_spill] sm:$0xff]  ;;  %v610_v48 = vld [vmem:[#allocation3 + $0x48] sm:$0xff] }
 0x313   :  { %v2065_v63 = vpop.eup %2064 }
 0x314   :  { %v603_v60 = vadd.f32 %v602_v47, %v445_v1  ;;  %v605_v55 = vsub.f32 1.0, %v2065_v63  ;;  %v607_v59 = vmul.f32 %v2065_v63, %v2566_v53  ;;  %v3140_v47 = vld [vmem:[#allocation12_spill] sm:$0xff]  ;;  %v3141_v53 = vld [vmem:[#allocation10_spill] sm:$0xff]  ;;  %v3142_v1 = vld [vmem:[#allocation11_spill] sm:$0xff] }
 0x316   :  { %2066 = vtanh.f32 %v603_v60 }
 0x323   :  { %v2067_v57 = vpop.eup %2066 }
 0x324   :  { %v606_v58 = vmul.f32 %v2067_v57, %v605_v55 }
 0x326   :  { %v2639_v56 = vadd.f32 %v607_v59, %v606_v58 }
 0x328   :  { %678 = vmatmul.mubr.f32.vlgmr.msra.gmra.mxu0 %v2639_v56  ;;  %1855 = vmatmul.mubr.f32.vlgmr.msra.gmra.mxu1 %v2639_v56 }
 0x329   :  { %781 = vmatpush1.msra.mxu0 %v2259_v2  ;;  %1858 = vmatpush3.msra.mxu1 %v2293_v14 }
 0x32a   :  { %782 = vmatprep.subr.mxu0 %v2261_v3  ;;  %1859 = vmatprep.subr.mxu1 %v3135_v0 }
 0x32b   :  { %783 = vmatpush1.msra.mxu0 %v2264_v4  ;;  %1860 = vmatpush3.msra.mxu1 %v2299_v16 }
 0x32c   :  { %784 = vmatprep.subr.mxu0 %v2267_v5  ;;  %1861 = vmatprep.subr.mxu1 %v3135_v0 }
 0x32d   :  { %785 = vmatpush1.msra.mxu0 %v2270_v6  ;;  %1862 = vmatpush3.msra.mxu1 %v2305_v18 }
 0x32e   :  { %786 = vmatprep.subr.mxu0 %v2273_v7  ;;  %1863 = vmatprep.subr.mxu1 %v3135_v0 }
 0x32f   :  { %787 = vmatpush1.msra.mxu0 %v2276_v8  ;;  %1864 = vmatpush3.msra.mxu1 %v2315_v21 }
 0x330   :  { %788 = vmatprep.subr.mxu0 %v2279_v9  ;;  %1865 = vmatprep.subr.mxu1 %v3135_v0 }
 0x331   :  { %789 = vmatpush1.msra.mxu0 %v2282_v10  ;;  %1866 = vmatpush3.msra.mxu1 %v2325_v24 }
 0x332   :  { %790 = vmatprep.subr.mxu0 %v2285_v11  ;;  %1867 = vmatprep.subr.mxu1 %v3135_v0 }
 0x333   :  { %791 = vmatpush1.msra.mxu0 %v2288_v12  ;;  %1868 = vmatpush3.msra.mxu1 %v2335_v27 }
 0x334   :  { %792 = vmatprep.subr.mxu0 %v2291_v13  ;;  %1869 = vmatprep.subr.mxu1 %v3135_v0 }
 0x335   :  { %793 = vmatpush1.msra.mxu0 %v2296_v15  ;;  %1870 = vmatpush3.msra.mxu1 %v2345_v30 }
 0x336   :  { %794 = vmatprep.subr.mxu0 %v2302_v17  ;;  %1871 = vmatprep.subr.mxu1 %v3135_v0 }
 0x337   :  { %795 = vmatpush1.msra.mxu0 %v2308_v19  ;;  %1872 = vmatpush3.msra.mxu1 %v2355_v33 }
 0x338   :  { %796 = vmatprep.subr.mxu0 %v2312_v20  ;;  %1873 = vmatprep.subr.mxu1 %v3135_v0 }
 0x339   :  { %797 = vmatpush1.msra.mxu0 %v2318_v22  ;;  %1874 = vmatpush3.msra.mxu1 %v2365_v36 }
 0x33a   :  { %798 = vmatprep.subr.mxu0 %v2322_v23  ;;  %1875 = vmatprep.subr.mxu1 %v3135_v0 }
 0x33b   :  { %799 = vmatpush1.msra.mxu0 %v2328_v25  ;;  %1876 = vmatpush3.msra.mxu1 %v2375_v39 }
 0x33c   :  { %800 = vmatprep.subr.mxu0 %v2332_v26  ;;  %1877 = vmatprep.subr.mxu1 %v3135_v0 }
 0x33d   :  { %801 = vmatpush1.msra.mxu0 %v2338_v28  ;;  %1878 = vmatpush3.msra.mxu1 %v2385_v42 }
 0x33e   :  { %802 = vmatprep.subr.mxu0 %v2342_v29  ;;  %1879 = vmatprep.subr.mxu1 %v3135_v0 }
 0x33f   :  { %803 = vmatpush1.msra.mxu0 %v2348_v31  ;;  %1880 = vmatpush3.msra.mxu1 %v2393_v44 }
 0x340   :  { %804 = vmatprep.subr.mxu0 %v2352_v32  ;;  %1881 = vmatprep.subr.mxu1 %v3135_v0 }
 0x341   :  { %805 = vmatpush1.msra.mxu0 %v2358_v34  ;;  %1882 = vmatpush3.msra.mxu1 %v2399_v45 }
 0x342   :  { %806 = vmatprep.subr.mxu0 %v2362_v35  ;;  %1883 = vmatprep.subr.mxu1 %v3135_v0 }
 0x343   :  { %807 = vmatpush1.msra.mxu0 %v2368_v37  ;;  %1884 = vmatpush3.msra.mxu1 %v2404_v46 }
 0x344   :  { %808 = vmatprep.subr.mxu0 %v2372_v38  ;;  %1885 = vmatprep.subr.mxu1 %v3135_v0 }
 0x345   :  { %809 = vmatpush1.msra.mxu0 %v2378_v40  ;;  %1886 = vmatpush3.msra.mxu1 %v3140_v47 }
 0x346   :  { %810 = vmatprep.subr.mxu0 %v3141_v53  ;;  %1887 = vmatprep.subr.mxu1 %v3135_v0  ;;  %v612_v53 = vld [vmem:[#allocation3 + $0x58] sm:$0xff] }
 0x347   :  { %811 = vmatpush1.msra.mxu0 %v3142_v1  ;;  %844 = vmatprep.mubr.f32.mxu0 %v3135_v0 }
 0x348   :  { %1888 = vmatpush3.msra.mxu1 %v3143_v41  ;;  %1889 = vmatprep.mubr.msk.f32.mxu1 %vm2216_vm0, %v3135_v0 }
 0x349   :  { %947 = vmatprep.subr.mxu0 %v3144_v43  ;;  %1892 = vmatprep.subr.mxu1 %v3135_v0 }
 0x3e8   :  { %v679_v54 = vpop.f32.mrf.mxu0  ;;  %v750_v61 = vpop.f32.mrf.mxu1 }
 0x3e9   :  { %v754_v49 = vadd.f32 %v679_v54, %v610_v48  ;;  %v768_v43 = vadd.f32 %v2490_v62, %v750_v61  ;;  %v2851_v61 = vld [vmem:[#allocation5 + $0xd8] sm:$0xff] }
 0x3ea   :  { %v1856_v50 = vpop.f32.mrf.mxu1  ;;  %v681_v60 = vpop.f32.mrf.mxu0 }
 0x3eb   :  { %v1553_v51 = vmul.f32 -1.442695, %v754_v49  ;;  %v761_v63 = vadd.f32 %v681_v60, %v611_v52 }
 0x3ed   :  { %2068 = vpow2.f32 %v1553_v51  ;;  %v1554_v55 = vmul.f32 -1.442695, %v761_v63  ;;  %v2854_v63 = vld [vmem:[#allocation5 + $0xe8] sm:$0xff] }
 0x3ef   :  { %2070 = vpow2.f32 %v1554_v55  ;;  %v2857_v55 = vld [vmem:[#allocation5 + $0xc8] sm:$0xff] }
 0x3fa   :  { %v2069_v57 = vpop.eup %2068 }
 0x3fb   :  { %v758_v58 = vadd.f32 1.0, %v2069_v57  ;;  %v2861_v57 = vld [vmem:[#allocation5 + $0xc0] sm:$0xff] }
 0x3fc   :  { %v2071_v59 = vpop.eup %2070 }
 0x3fd   :  { %2072 = vrcp.f32 %v758_v58  ;;  %v765_v41 = vadd.f32 1.0, %v2071_v59  ;;  %v2864_v58 = vld [vmem:[#allocation5 + $0xd0] sm:$0xff] }
 0x3fe   :  { %v2867_v59 = vld [vmem:[#allocation5 + $0xb0] sm:$0xff] }
 0x3ff   :  { %2074 = vrcp.f32 %v765_v41  ;;  %v2847_v41 = vld [vmem:[#allocation5 + $0xe0] sm:$0xff] }
 0x40a   :  { %v2073_v1 = vpop.eup %2072 }
 0x40b   :  { %v769_v47 = vmul.f32 %v2073_v1, %v768_v43  ;;  %v2844_v1 = vld [vmem:[#allocation5 + $0x100] sm:$0xff]  ;;  %v2871_v43 = vld [vmem:[#allocation5 + $0xa8] sm:$0xff] }
 0x40c   :  { %v2075_v54 = vpop.eup %2074 }
 0x40d   :  { %v770_v48 = vadd.f32 %v769_v47, %v612_v53  ;;  %v772_v49 = vsub.f32 1.0, %v2075_v54  ;;  %v774_v52 = vmul.f32 %v2075_v54, %v2639_v56  ;;  %v2834_v56 = vld [vmem:[#allocation5 + $0x118] sm:$0xff]  ;;  %v2841_v53 = vld [vmem:[#allocation5 + $0xf0] sm:$0xff] }
 0x40e   :  { %v2837_v47 = vld [vmem:[#allocation5 + $0xf8] sm:$0xff] }
 0x40f   :  { %2076 = vtanh.f32 %v770_v48  ;;  %v2874_v48 = vld [vmem:[#allocation5 + $0xb8] sm:$0xff] }
 0x410   :  { %v2877_v54 = vld [vmem:[#allocation5 + $0x98] sm:$0xff] }
 0x41c   :  { %v2077_v50 = vpop.eup %2076 }
 0x41d   :  { %v773_v51 = vmul.f32 %v2077_v50, %v772_v49  ;;  %v2881_v49 = vld [vmem:[#allocation5 + $0x90] sm:$0xff]  ;;  %v2884_v50 = vld [vmem:[#allocation5 + $0xa0] sm:$0xff] }
 0x41f   :  { %v2712_v60 = vadd.f32 %v774_v52, %v773_v51  ;;  %v2887_v51 = vld [vmem:[#allocation5 + $0x80] sm:$0xff]  ;;  %v2891_v52 = vld [vmem:[#allocation5 + $0x78] sm:$0xff] }
 0x421   :  { %845 = vmatmul.mubr.f32.vlgmr.msra.gmra.mxu0 %v2712_v60  ;;  %1890 = vmatmul.mubr.f32.vlgmr.msra.gmra.mxu1 %v2712_v60 }
 0x422   :  { %948 = vmatpush1.msra.mxu0 %v2259_v2  ;;  %1893 = vmatpush3.msra.mxu1 %v2293_v14  ;;  %v3145_v2 = vld [vmem:[#allocation12_spill] sm:$0xff] }
 0x423   :  { %949 = vmatprep.subr.mxu0 %v2261_v3  ;;  %1894 = vmatprep.subr.mxu1 %v3135_v0  ;;  %v3146_v3 = vld [vmem:[#allocation10_spill] sm:$0xff] }
 0x424   :  { %950 = vmatpush1.msra.mxu0 %v2264_v4  ;;  %1895 = vmatpush3.msra.mxu1 %v2299_v16  ;;  %v3147_v4 = vld [vmem:[#allocation11_spill] sm:$0xff] }
 0x425   :  { %951 = vmatprep.subr.mxu0 %v2267_v5  ;;  %1896 = vmatprep.subr.mxu1 %v3135_v0  ;;  %v3148_v5 = vld [vmem:[#allocation13_spill] sm:$0xff] }
 0x426   :  { %952 = vmatpush1.msra.mxu0 %v2270_v6  ;;  %1897 = vmatpush3.msra.mxu1 %v2305_v18  ;;  %v2781_v6 = vld [vmem:[#allocation5 + $0x170] sm:$0xff] }
 0x427   :  { %953 = vmatprep.subr.mxu0 %v2273_v7  ;;  %1898 = vmatprep.subr.mxu1 %v3135_v0  ;;  %v777_v7 = vld [vmem:[#allocation3 + $0x60] sm:$0xff] }
 0x428   :  { %954 = vmatpush1.msra.mxu0 %v2276_v8  ;;  %1899 = vmatpush3.msra.mxu1 %v2315_v21 }
 0x429   :  { %955 = vmatprep.subr.mxu0 %v2279_v9  ;;  %1900 = vmatprep.subr.mxu1 %v3135_v0 }
 0x42a   :  { %956 = vmatpush1.msra.mxu0 %v2282_v10  ;;  %1901 = vmatpush3.msra.mxu1 %v2325_v24 }
 0x42b   :  { %957 = vmatprep.subr.mxu0 %v2285_v11  ;;  %1902 = vmatprep.subr.mxu1 %v3135_v0 }
 0x42c   :  { %958 = vmatpush1.msra.mxu0 %v2288_v12  ;;  %1903 = vmatpush3.msra.mxu1 %v2335_v27 }
 0x42d   :  { %959 = vmatprep.subr.mxu0 %v2291_v13  ;;  %1904 = vmatprep.subr.mxu1 %v3135_v0  ;;  %v778_v13 = vld [vmem:[#allocation3 + $0x68] sm:$0xff] }
 0x42e   :  { %960 = vmatpush1.msra.mxu0 %v2296_v15  ;;  %1905 = vmatpush3.msra.mxu1 %v2345_v30 }
 0x42f   :  { %961 = vmatprep.subr.mxu0 %v2302_v17  ;;  %1906 = vmatprep.subr.mxu1 %v3135_v0 }
 0x430   :  { %962 = vmatpush1.msra.mxu0 %v2308_v19  ;;  %1907 = vmatpush3.msra.mxu1 %v2355_v33  ;;  %v2794_v33 = vld [vmem:[#allocation5 + $0x178] sm:$0xff] }
 0x431   :  { %963 = vmatprep.subr.mxu0 %v2312_v20  ;;  %1908 = vmatprep.subr.mxu1 %v3135_v0 }
 0x432   :  { %964 = vmatpush1.msra.mxu0 %v2318_v22  ;;  %1909 = vmatpush3.msra.mxu1 %v2365_v36  ;;  %v2804_v36 = vld [vmem:[#allocation5 + $0x160] sm:$0xff] }
 0x433   :  { %965 = vmatprep.subr.mxu0 %v2322_v23  ;;  %1910 = vmatprep.subr.mxu1 %v3135_v0  ;;  %v779_v23 = vld [vmem:[#allocation3 + $0x70] sm:$0xff] }
 0x434   :  { %966 = vmatpush1.msra.mxu0 %v2328_v25  ;;  %1911 = vmatpush3.msra.mxu1 %v2375_v39  ;;  %v2814_v39 = vld [vmem:[#allocation5 + $0x148] sm:$0xff] }
 0x435   :  { %967 = vmatprep.subr.mxu0 %v2332_v26  ;;  %1912 = vmatprep.subr.mxu1 %v3135_v0 }
 0x436   :  { %968 = vmatpush1.msra.mxu0 %v2338_v28  ;;  %1913 = vmatpush3.msra.mxu1 %v2385_v42  ;;  %v2821_v42 = vld [vmem:[#allocation5 + $0x120] sm:$0xff] }
 0x437   :  { %969 = vmatprep.subr.mxu0 %v2342_v29  ;;  %1914 = vmatprep.subr.mxu1 %v3135_v0 }
 0x438   :  { %970 = vmatpush1.msra.mxu0 %v2348_v31  ;;  %1915 = vmatpush3.msra.mxu1 %v2393_v44  ;;  %v2824_v44 = vld [vmem:[#allocation5 + $0x130] sm:$0xff] }
 0x439   :  { %971 = vmatprep.subr.mxu0 %v2352_v32  ;;  %1916 = vmatprep.subr.mxu1 %v3135_v0  ;;  %v2791_v32 = vld [vmem:[#allocation5 + $0x168] sm:$0xff] }
 0x43a   :  { %972 = vmatpush1.msra.mxu0 %v2358_v34  ;;  %1917 = vmatpush3.msra.mxu1 %v2399_v45  ;;  %v2797_v34 = vld [vmem:[#allocation5 + $0x158] sm:$0xff]  ;;  %v2827_v45 = vld [vmem:[#allocation5 + $0x110] sm:$0xff] }
 0x43b   :  { %973 = vmatprep.subr.mxu0 %v2362_v35  ;;  %1918 = vmatprep.subr.mxu1 %v3135_v0  ;;  %v2801_v35 = vld [vmem:[#allocation5 + $0x150] sm:$0xff] }
 0x43c   :  { %974 = vmatpush1.msra.mxu0 %v2368_v37  ;;  %1919 = vmatpush3.msra.mxu1 %v2404_v46  ;;  %v2807_v37 = vld [vmem:[#allocation5 + $0x140] sm:$0xff]  ;;  %v2831_v46 = vld [vmem:[#allocation5 + $0x108] sm:$0xff] }
 0x43d   :  { %975 = vmatprep.subr.mxu0 %v2372_v38  ;;  %1920 = vmatprep.subr.mxu1 %v3135_v0  ;;  %v2811_v38 = vld [vmem:[#allocation5 + $0x138] sm:$0xff] }
 0x43e   :  { %976 = vmatpush1.msra.mxu0 %v2378_v40  ;;  %1921 = vmatpush3.msra.mxu1 %v3145_v2  ;;  %v2817_v40 = vld [vmem:[#allocation5 + $0x128] sm:$0xff] }
 0x43f   :  { %977 = vmatprep.subr.mxu0 %v3146_v3  ;;  %1922 = vmatprep.subr.mxu1 %v3135_v0  ;;  %v2897_v2 = vld [vmem:[#allocation5 + $0x68] sm:$0xff]  ;;  %v2901_v3 = vld [vmem:[#allocation5 + $0x60] sm:$0xff] }
 0x440   :  { %978 = vmatpush1.msra.mxu0 %v3147_v4  ;;  %1011 = vmatprep.mubr.f32.mxu0 %v3135_v0  ;;  %v2904_v4 = vld [vmem:[#allocation5 + $0x70] sm:$0xff] }
 0x441   :  { %1923 = vmatpush3.msra.mxu1 %v3148_v5  ;;  %1924 = vmatprep.mubr.msk.f32.mxu1 %vm2216_vm0, %v3135_v0  ;;  %v2907_v5 = vld [vmem:[#allocation5 + $0x50] sm:$0xff] }
 0x442   :  { %1114 = vmatprep.subr.mxu0 %v2781_v6  ;;  %1927 = vmatprep.subr.mxu1 %v3135_v0 }
 0x4e1   :  { %v846_v8 = vpop.f32.mrf.mxu0  ;;  %v917_v9 = vpop.f32.mrf.mxu1 }
 0x4e2   :  { %v921_v10 = vadd.f32 %v846_v8, %v777_v7  ;;  %v935_v21 = vadd.f32 %v2490_v62, %v917_v9  ;;  %v2911_v7 = vld [vmem:[#allocation5 + $0x48] sm:$0xff]  ;;  %v2914_v8 = vld [vmem:[#allocation5 + $0x58] sm:$0xff] }
 0x4e3   :  { %v1891_v11 = vpop.f32.mrf.mxu1  ;;  %v848_v14 = vpop.f32.mrf.mxu0  ;;  %v2917_v9 = vld [vmem:[#allocation5 + $0x38] sm:$0xff] }
 0x4e4   :  { %v1555_v12 = vmul.f32 -1.442695, %v921_v10  ;;  %v928_v15 = vadd.f32 %v848_v14, %v778_v13  ;;  %v2921_v10 = vld [vmem:[#allocation5 + $0x30] sm:$0xff]  ;;  %v2924_v11 = vld [vmem:[#allocation5 + $0x40] sm:$0xff]  ;;  %v2931_v13 = vld [vmem:[#allocation5 + $0x18] sm:$0xff] }
 0x4e5   :  { %v2934_v14 = vld [vmem:[#allocation5 + $0x28] sm:$0xff] }
 0x4e6   :  { %2078 = vpow2.f32 %v1555_v12  ;;  %v1556_v16 = vmul.f32 -1.442695, %v928_v15  ;;  %v2927_v12 = vld [vmem:[#allocation5 + $0x20] sm:$0xff]  ;;  %3149 = vst [vmem:[#allocation9_spill] sm:$0xff] %v2934_v14  ;;  %v2937_v15 = vld [vmem:[#allocation5 + $0x8] sm:$0xff] }
 0x4e7   :  { %3150 = vst [vmem:[#allocation12_spill] sm:$0xff] %v2937_v15 }
 0x4e8   :  { %2080 = vpow2.f32 %v1556_v16  ;;  %v2941_v16 = vld [vmem:[#allocation5] sm:$0xff] }
 0x4e9   :  { %3151 = vst [vmem:[#allocation10_spill] sm:$0xff] %v2941_v16 }
 0x4f3   :  { %v2079_v17 = vpop.eup %2078 }
 0x4f4   :  { %v925_v18 = vadd.f32 1.0, %v2079_v17  ;;  %v2945_v17 = vld [vmem:[#allocation5 + $0x10] sm:$0xff] }
 0x4f5   :  { %v2081_v19 = vpop.eup %2080  ;;  %3152 = vst [vmem:[#allocation11_spill] sm:$0xff] %v2945_v17 }
 0x4f6   :  { %2082 = vrcp.f32 %v925_v18  ;;  %v932_v20 = vadd.f32 1.0, %v2081_v19  ;;  %v944_v18 = vld [vmem:[#allocation3 + $0x78] sm:$0xff] }
 0x4f8   :  { %2084 = vrcp.f32 %v932_v20 }
 0x503   :  { %v2083_v22 = vpop.eup %2082 }
 0x504   :  { %v936_v24 = vmul.f32 %v2083_v22, %v935_v21 }
 0x505   :  { %v2085_v26 = vpop.eup %2084 }
 0x506   :  { %v937_v25 = vadd.f32 %v936_v24, %v779_v23  ;;  %v939_v27 = vsub.f32 1.0, %v2085_v26  ;;  %v941_v30 = vmul.f32 %v2085_v26, %v2712_v60  ;;  %v2894_v60 = vld [vmem:[#allocation5 + $0x88] sm:$0xff]  ;;  %v945_v24 = vld [vmem:[#allocation3 + $0x80] sm:$0xff] }
 0x508   :  { %2086 = vtanh.f32 %v937_v25 }
 0x515   :  { %v2087_v28 = vpop.eup %2086 }
 0x516   :  { %v940_v29 = vmul.f32 %v2087_v28, %v939_v27 }
 0x518   :  { %v2787_v31 = vadd.f32 %v941_v30, %v940_v29 }
 0x51a   :  { %1012 = vmatmul.mubr.f32.vlgmr.msra.gmra.mxu0 %v2787_v31  ;;  %1925 = vmatmul.mubr.f32.vlgmr.msra.gmra.mxu1 %v2787_v31 }
 0x51b   :  { %1115 = vmatpush1.msra.mxu0 %v2791_v32  ;;  %1928 = vmatpush3.msra.mxu1 %v2794_v33 }
 0x51c   :  { %1116 = vmatprep.subr.mxu0 %v2797_v34  ;;  %1929 = vmatprep.subr.mxu1 %v3135_v0 }
 0x51d   :  { %1117 = vmatpush1.msra.mxu0 %v2801_v35  ;;  %1930 = vmatpush3.msra.mxu1 %v2804_v36 }
 0x51e   :  { %1118 = vmatprep.subr.mxu0 %v2807_v37  ;;  %1931 = vmatprep.subr.mxu1 %v3135_v0 }
 0x51f   :  { %1119 = vmatpush1.msra.mxu0 %v2811_v38  ;;  %1932 = vmatpush3.msra.mxu1 %v2814_v39 }
 0x520   :  { %1120 = vmatprep.subr.mxu0 %v2817_v40  ;;  %1933 = vmatprep.subr.mxu1 %v3135_v0 }
 0x521   :  { %1121 = vmatpush1.msra.mxu0 %v2821_v42  ;;  %1934 = vmatpush3.msra.mxu1 %v2824_v44 }
 0x522   :  { %1122 = vmatprep.subr.mxu0 %v2827_v45  ;;  %1935 = vmatprep.subr.mxu1 %v3135_v0 }
 0x523   :  { %1123 = vmatpush1.msra.mxu0 %v2831_v46  ;;  %1936 = vmatpush3.msra.mxu1 %v2834_v56 }
 0x524   :  { %1124 = vmatprep.subr.mxu0 %v2837_v47  ;;  %1937 = vmatprep.subr.mxu1 %v3135_v0 }
 0x525   :  { %1125 = vmatpush1.msra.mxu0 %v2841_v53  ;;  %1938 = vmatpush3.msra.mxu1 %v2844_v1 }
 0x526   :  { %1126 = vmatprep.subr.mxu0 %v2847_v41  ;;  %1939 = vmatprep.subr.mxu1 %v3135_v0 }
 0x527   :  { %1127 = vmatpush1.msra.mxu0 %v2851_v61  ;;  %1940 = vmatpush3.msra.mxu1 %v2854_v63 }
 0x528   :  { %1128 = vmatprep.subr.mxu0 %v2857_v55  ;;  %1941 = vmatprep.subr.mxu1 %v3135_v0 }
 0x529   :  { %1129 = vmatpush1.msra.mxu0 %v2861_v57  ;;  %1942 = vmatpush3.msra.mxu1 %v2864_v58 }
 0x52a   :  { %1130 = vmatprep.subr.mxu0 %v2867_v59  ;;  %1943 = vmatprep.subr.mxu1 %v3135_v0 }
 0x52b   :  { %1131 = vmatpush1.msra.mxu0 %v2871_v43  ;;  %1944 = vmatpush3.msra.mxu1 %v2874_v48 }
 0x52c   :  { %1132 = vmatprep.subr.mxu0 %v2877_v54  ;;  %1945 = vmatprep.subr.mxu1 %v3135_v0 }
 0x52d   :  { %1133 = vmatpush1.msra.mxu0 %v2881_v49  ;;  %1946 = vmatpush3.msra.mxu1 %v2884_v50 }
 0x52e   :  { %1134 = vmatprep.subr.mxu0 %v2887_v51  ;;  %1947 = vmatprep.subr.mxu1 %v3135_v0 }
 0x52f   :  { %1135 = vmatpush1.msra.mxu0 %v2891_v52  ;;  %1948 = vmatpush3.msra.mxu1 %v2894_v60 }
 0x530   :  { %1136 = vmatprep.subr.mxu0 %v2897_v2  ;;  %1949 = vmatprep.subr.mxu1 %v3135_v0 }
 0x531   :  { %1137 = vmatpush1.msra.mxu0 %v2901_v3  ;;  %1950 = vmatpush3.msra.mxu1 %v2904_v4 }
 0x532   :  { %1138 = vmatprep.subr.mxu0 %v2907_v5  ;;  %1951 = vmatprep.subr.mxu1 %v3135_v0 }
 0x533   :  { %1139 = vmatpush1.msra.mxu0 %v2911_v7  ;;  %1952 = vmatpush3.msra.mxu1 %v2914_v8 }
 0x534   :  { %1140 = vmatprep.subr.mxu0 %v2917_v9  ;;  %1953 = vmatprep.subr.mxu1 %v3135_v0 }
 0x535   :  { %1141 = vmatpush1.msra.mxu0 %v2921_v10  ;;  %1954 = vmatpush3.msra.mxu1 %v2924_v11 }
 0x536   :  { %1142 = vmatprep.subr.mxu0 %v2927_v12  ;;  %1955 = vmatprep.subr.mxu1 %v3135_v0 }
 0x537   :  { %1143 = vmatpush1.msra.mxu0 %v2931_v13  ;;  %1956 = vmatpush3.msra.mxu1 %v2934_v14 }
 0x538   :  { %1144 = vmatprep.subr.mxu0 %v2937_v15  ;;  %1957 = vmatprep.subr.mxu1 %v3135_v0  ;;  %v946_v15 = vld [vmem:[#allocation3 + $0x88] sm:$0xff] }
 0x539   :  { %1145 = vmatpush1.msra.mxu0 %v2941_v16  ;;  %1178 = vmatprep.mubr.f32.mxu0 %v3135_v0 }
 0x53a   :  { %1958 = vmatpush3.msra.mxu1 %v2945_v17  ;;  %1959 = vmatprep.mubr.msk.f32.mxu1 %vm2216_vm0, %v3135_v0 }
 0x53b   :  { %1281 = vmatprep.subr.mxu0 %v2781_v6  ;;  %1962 = vmatprep.subr.mxu1 %v3135_v0 }
 0x5da   :  { %v1013_v19 = vpop.f32.mrf.mxu0  ;;  %v1084_v20 = vpop.f32.mrf.mxu1 }
 0x5db   :  { %v1088_v21 = vadd.f32 %v1013_v19, %v944_v18  ;;  %v1102_v6 = vadd.f32 %v2490_v62, %v1084_v20  ;;  %v3153_v62 = vld [vmem:[#allocation9_spill] sm:$0xff] }
 0x5dc   :  { %v1926_v22 = vpop.f32.mrf.mxu1  ;;  %v1015_v25 = vpop.f32.mrf.mxu0 }
 0x5dd   :  { %v1557_v23 = vmul.f32 -1.442695, %v1088_v21  ;;  %v1095_v26 = vadd.f32 %v1015_v25, %v945_v24 }
 0x5df   :  { %2088 = vpow2.f32 %v1557_v23  ;;  %v1558_v27 = vmul.f32 -1.442695, %v1095_v26 }
 0x5e1   :  { %2090 = vpow2.f32 %v1558_v27 }
 0x5ec   :  { %v2089_v28 = vpop.eup %2088 }
 0x5ed   :  { %v1092_v29 = vadd.f32 1.0, %v2089_v28  ;;  %v1279_v28 = vld [vmem:[#allocation3 + $0xb0] sm:$0xff] }
 0x5ee   :  { %v2091_v30 = vpop.eup %2090 }
 0x5ef   :  { %2092 = vrcp.f32 %v1092_v29  ;;  %v1099_v17 = vadd.f32 1.0, %v2091_v30 }
 0x5f1   :  { %2094 = vrcp.f32 %v1099_v17 }
 0x5fc   :  { %v2093_v16 = vpop.eup %2092 }
 0x5fd   :  { %v1103_v14 = vmul.f32 %v2093_v16, %v1102_v6 }
 0x5fe   :  { %v2095_v19 = vpop.eup %2094 }
 0x5ff   :  { %v1104_v18 = vadd.f32 %v1103_v14, %v946_v15  ;;  %v1106_v21 = vsub.f32 1.0, %v2095_v19  ;;  %v1108_v24 = vmul.f32 %v2095_v19, %v2787_v31  ;;  %v3154_v31 = vld [vmem:[#allocation12_spill] sm:$0xff]  ;;  %v1445_v14 = vld [vmem:[%s3111_s3] sm:$0xff]  ;;  %v1278_v15 = vld [vmem:[#allocation3 + $0xa8] sm:$0xff] }
 0x601   :  { %2096 = vtanh.f32 %v1104_v18 }
 0x60e   :  { %v2097_v22 = vpop.eup %2096 }
 0x60f   :  { %v1107_v23 = vmul.f32 %v2097_v22, %v1106_v21 }
 0x611   :  { %v2954_v25 = vadd.f32 %v1108_v24, %v1107_v23  ;;  %v1280_v24 = vld [vmem:[#allocation3 + $0xb8] sm:$0xff] }
 0x613   :  { %1179 = vmatmul.mubr.f32.vlgmr.msra.gmra.mxu0 %v2954_v25  ;;  %1960 = vmatmul.mubr.f32.vlgmr.msra.gmra.mxu1 %v2954_v25 }
 0x614   :  { %1282 = vmatpush1.msra.mxu0 %v2791_v32  ;;  %1963 = vmatpush3.msra.mxu1 %v2794_v33  ;;  %v3155_v32 = vld [vmem:[#allocation10_spill] sm:$0xff]  ;;  %v3156_v33 = vld [vmem:[#allocation11_spill] sm:$0xff] }
 0x615   :  { %1283 = vmatprep.subr.mxu0 %v2797_v34  ;;  %1964 = vmatprep.subr.mxu1 %v3135_v0  ;;  %v1111_v34 = vld [vmem:[#allocation3 + $0x90] sm:$0xff] }
 0x616   :  { %1284 = vmatpush1.msra.mxu0 %v2801_v35  ;;  %1965 = vmatpush3.msra.mxu1 %v2804_v36 }
 0x617   :  { %1285 = vmatprep.subr.mxu0 %v2807_v37  ;;  %1966 = vmatprep.subr.mxu1 %v3135_v0 }
 0x618   :  { %1286 = vmatpush1.msra.mxu0 %v2811_v38  ;;  %1967 = vmatpush3.msra.mxu1 %v2814_v39 }
 0x619   :  { %1287 = vmatprep.subr.mxu0 %v2817_v40  ;;  %1968 = vmatprep.subr.mxu1 %v3135_v0  ;;  %v1112_v40 = vld [vmem:[#allocation3 + $0x98] sm:$0xff] }
 0x61a   :  { %1288 = vmatpush1.msra.mxu0 %v2821_v42  ;;  %1969 = vmatpush3.msra.mxu1 %v2824_v44 }
 0x61b   :  { %1289 = vmatprep.subr.mxu0 %v2827_v45  ;;  %1970 = vmatprep.subr.mxu1 %v3135_v0 }
 0x61c   :  { %1290 = vmatpush1.msra.mxu0 %v2831_v46  ;;  %1971 = vmatpush3.msra.mxu1 %v2834_v56 }
 0x61d   :  { %1291 = vmatprep.subr.mxu0 %v2837_v47  ;;  %1972 = vmatprep.subr.mxu1 %v3135_v0 }
 0x61e   :  { %1292 = vmatpush1.msra.mxu0 %v2841_v53  ;;  %1973 = vmatpush3.msra.mxu1 %v2844_v1  ;;  %v3027_v1 = vld [vmem:[%s3110_s2] ss:$0 sm:$0xff] }
 0x61f   :  { %1293 = vmatprep.subr.mxu0 %v2847_v41  ;;  %1974 = vmatprep.subr.mxu1 %v3135_v0 }
 0x620   :  { %1294 = vmatpush1.msra.mxu0 %v2851_v61  ;;  %1975 = vmatpush3.msra.mxu1 %v2854_v63  ;;  %v1113_v63 = vld [vmem:[#allocation3 + $0xa0] sm:$0xff] }
 0x621   :  { %1295 = vmatprep.subr.mxu0 %v2857_v55  ;;  %1976 = vmatprep.subr.mxu1 %v3135_v0 }
 0x622   :  { %1296 = vmatpush1.msra.mxu0 %v2861_v57  ;;  %1977 = vmatpush3.msra.mxu1 %v2864_v58 }
 0x623   :  { %1297 = vmatprep.subr.mxu0 %v2867_v59  ;;  %1978 = vmatprep.subr.mxu1 %v3135_v0 }
 0x624   :  { %1298 = vmatpush1.msra.mxu0 %v2871_v43  ;;  %1979 = vmatpush3.msra.mxu1 %v2874_v48 }
 0x625   :  { %1299 = vmatprep.subr.mxu0 %v2877_v54  ;;  %1980 = vmatprep.subr.mxu1 %v3135_v0 }
 0x626   :  { %1300 = vmatpush1.msra.mxu0 %v2881_v49  ;;  %1981 = vmatpush3.msra.mxu1 %v2884_v50  ;;  %v1460_v50 = vld [vmem:[%s3111_s3 + $0x78] sm:$0xff] }
 0x627   :  { %1301 = vmatprep.subr.mxu0 %v2887_v51  ;;  %1982 = vmatprep.subr.mxu1 %v3135_v0  ;;  %v1459_v51 = vld [vmem:[%s3111_s3 + $0x70] sm:$0xff] }
 0x628   :  { %1302 = vmatpush1.msra.mxu0 %v2891_v52  ;;  %1983 = vmatpush3.msra.mxu1 %v2894_v60  ;;  %v1458_v52 = vld [vmem:[%s3111_s3 + $0x68] sm:$0xff]  ;;  %v1457_v60 = vld [vmem:[%s3111_s3 + $0x60] sm:$0xff] }
 0x629   :  { %1303 = vmatprep.subr.mxu0 %v2897_v2  ;;  %1984 = vmatprep.subr.mxu1 %v3135_v0  ;;  %v1456_v2 = vld [vmem:[%s3111_s3 + $0x58] sm:$0xff] }
 0x62a   :  { %1304 = vmatpush1.msra.mxu0 %v2901_v3  ;;  %1985 = vmatpush3.msra.mxu1 %v2904_v4  ;;  %v1455_v3 = vld [vmem:[%s3111_s3 + $0x50] sm:$0xff]  ;;  %v1454_v4 = vld [vmem:[%s3111_s3 + $0x48] sm:$0xff] }
 0x62b   :  { %1305 = vmatprep.subr.mxu0 %v2907_v5  ;;  %1986 = vmatprep.subr.mxu1 %v3135_v0  ;;  %v1453_v5 = vld [vmem:[%s3111_s3 + $0x40] sm:$0xff] }
 0x62c   :  { %1306 = vmatpush1.msra.mxu0 %v2911_v7  ;;  %1987 = vmatpush3.msra.mxu1 %v2914_v8  ;;  %v1452_v7 = vld [vmem:[%s3111_s3 + $0x38] sm:$0xff]  ;;  %v1451_v8 = vld [vmem:[%s3111_s3 + $0x30] sm:$0xff] }
 0x62d   :  { %1307 = vmatprep.subr.mxu0 %v2917_v9  ;;  %1988 = vmatprep.subr.mxu1 %v3135_v0  ;;  %v1450_v9 = vld [vmem:[%s3111_s3 + $0x28] sm:$0xff] }
 0x62e   :  { %1308 = vmatpush1.msra.mxu0 %v2921_v10  ;;  %1989 = vmatpush3.msra.mxu1 %v2924_v11  ;;  %v1449_v10 = vld [vmem:[%s3111_s3 + $0x20] sm:$0xff]  ;;  %v1448_v11 = vld [vmem:[%s3111_s3 + $0x18] sm:$0xff] }
 0x62f   :  { %1309 = vmatprep.subr.mxu0 %v2927_v12  ;;  %1990 = vmatprep.subr.mxu1 %v3135_v0  ;;  %v1447_v12 = vld [vmem:[%s3111_s3 + $0x10] sm:$0xff] }
 0x630   :  { %1310 = vmatpush1.msra.mxu0 %v2931_v13  ;;  %1991 = vmatpush3.msra.mxu1 %v3153_v62  ;;  %v1446_v13 = vld [vmem:[%s3111_s3 + $0x8] sm:$0xff] }
 0x631   :  { %1311 = vmatprep.subr.mxu0 %v3154_v31  ;;  %1992 = vmatprep.subr.mxu1 %v3135_v0 }
 0x632   :  { %1312 = vmatpush1.msra.mxu0 %v3155_v32  ;;  %1345 = vmatprep.mubr.f32.mxu0 %v3135_v0 }
 0x633   :  { %1993 = vmatpush3.msra.mxu1 %v3156_v33  ;;  %1994 = vmatprep.mubr.msk.f32.mxu1 %vm2216_vm0, %v3135_v0 }
 0x634   :  { %1997 = vmatprep.subr.mxu0 %v3135_v0 }
 0x6d3   :  { %v1180_v35 = vpop.f32.mrf.mxu0  ;;  %v1251_v36 = vpop.f32.mrf.mxu1 }
 0x6d4   :  { %v1255_v37 = vadd.f32 %v1180_v35, %v1111_v34  ;;  %v1269_v41 = vadd.f32 %v3027_v1, %v1251_v36 }
 0x6d5   :  { %v1961_v38 = vpop.f32.mrf.mxu1  ;;  %v1182_v42 = vpop.f32.mrf.mxu0 }
 0x6d6   :  { %v1559_v39 = vmul.f32 -1.442695, %v1255_v37  ;;  %v1262_v44 = vadd.f32 %v1182_v42, %v1112_v40  ;;  %v1563_v37 = vld [vmem:[%s3112_s4] ss:$0 sm:$0xff] }
 0x6d8   :  { %2098 = vpow2.f32 %v1559_v39  ;;  %v1560_v45 = vmul.f32 -1.442695, %v1262_v44 }
 0x6da   :  { %2100 = vpow2.f32 %v1560_v45 }
 0x6e5   :  { %v2099_v46 = vpop.eup %2098 }
 0x6e6   :  { %v1259_v56 = vadd.f32 1.0, %v2099_v46 }
 0x6e7   :  { %v2101_v47 = vpop.eup %2100 }
 0x6e8   :  { %2102 = vrcp.f32 %v1259_v56  ;;  %v1266_v53 = vadd.f32 1.0, %v2101_v47 }
 0x6ea   :  { %2104 = vrcp.f32 %v1266_v53 }
 0x6f5   :  { %v2103_v61 = vpop.eup %2102 }
 0x6f6   :  { %v1270_v55 = vmul.f32 %v2103_v61, %v1269_v41 }
 0x6f7   :  { %v2105_v58 = vpop.eup %2104 }
 0x6f8   :  { %v1271_v57 = vadd.f32 %v1270_v55, %v1113_v63  ;;  %v1273_v59 = vsub.f32 1.0, %v2105_v58  ;;  %v1275_v54 = vmul.f32 %v2105_v58, %v2954_v25 }
 0x6fa   :  { %2106 = vtanh.f32 %v1271_v57 }
 0x707   :  { %v2107_v43 = vpop.eup %2106 }
 0x708   :  { %v1274_v48 = vmul.f32 %v2107_v43, %v1273_v59 }
 0x70a   :  { %v3031_v49 = vadd.f32 %v1275_v54, %v1274_v48 }
 0x70c   :  { %1346 = vmatmul.mubr.f32.vlgmr.msra.gmra.mxu0 %v3031_v49  ;;  %1995 = vmatmul.mubr.f32.vlgmr.msra.gmra.mxu1 %v3031_v49 }
 0x70d   :  { %2029 = vmatprep.mubr.msk.f32.mxu0 %vm2216_vm0, %v3135_v0  ;;  %1998 = vmatpush3.msra.mxu0 %v1460_v50 }
 0x70e   :  { %1999 = vmatprep.subr.mxu0 %v3135_v0 }
 0x70f   :  { %2000 = vmatpush3.msra.mxu0 %v1459_v51 }
 0x710   :  { %2001 = vmatprep.subr.mxu0 %v3135_v0 }
 0x711   :  { %2002 = vmatpush3.msra.mxu0 %v1458_v52 }
 0x712   :  { %2003 = vmatprep.subr.mxu0 %v3135_v0 }
 0x713   :  { %2004 = vmatpush3.msra.mxu0 %v1457_v60 }
 0x714   :  { %2005 = vmatprep.subr.mxu0 %v3135_v0 }
 0x715   :  { %2006 = vmatpush3.msra.mxu0 %v1456_v2 }
 0x716   :  { %2007 = vmatprep.subr.mxu0 %v3135_v0 }
 0x717   :  { %2008 = vmatpush3.msra.mxu0 %v1455_v3 }
 0x718   :  { %2009 = vmatprep.subr.mxu0 %v3135_v0 }
 0x719   :  { %2010 = vmatpush3.msra.mxu0 %v1454_v4 }
 0x71a   :  { %2011 = vmatprep.subr.mxu0 %v3135_v0 }
 0x71b   :  { %2012 = vmatpush3.msra.mxu0 %v1453_v5 }
 0x71c   :  { %2013 = vmatprep.subr.mxu0 %v3135_v0 }
 0x71d   :  { %2014 = vmatpush3.msra.mxu0 %v1452_v7 }
 0x71e   :  { %2015 = vmatprep.subr.mxu0 %v3135_v0 }
 0x71f   :  { %2016 = vmatpush3.msra.mxu0 %v1451_v8 }
 0x720   :  { %2017 = vmatprep.subr.mxu0 %v3135_v0 }
 0x721   :  { %2018 = vmatpush3.msra.mxu0 %v1450_v9 }
 0x722   :  { %2019 = vmatprep.subr.mxu0 %v3135_v0 }
 0x723   :  { %2020 = vmatpush3.msra.mxu0 %v1449_v10 }
 0x724   :  { %2021 = vmatprep.subr.mxu0 %v3135_v0 }
 0x725   :  { %2022 = vmatpush3.msra.mxu0 %v1448_v11 }
 0x726   :  { %2023 = vmatprep.subr.mxu0 %v3135_v0 }
 0x727   :  { %2024 = vmatpush3.msra.mxu0 %v1447_v12 }
 0x728   :  { %2025 = vmatprep.subr.mxu0 %v3135_v0 }
 0x729   :  { %2026 = vmatpush3.msra.mxu0 %v1446_v13 }
 0x72a   :  { %2027 = vmatprep.subr.mxu0 %v3135_v0 }
 0x72b   :  { %2028 = vmatpush3.msra.mxu0 %v1445_v14 }
 0x7cc   :  { %v1347_v16 = vpop.f32.mrf.mxu0  ;;  %v1418_v17 = vpop.f32.mrf.mxu1 }
 0x7cd   :  { %v1422_v20 = vadd.f32 %v1347_v16, %v1278_v15  ;;  %v1436_v0 = vadd.f32 %v3027_v1, %v1418_v17 }
 0x7ce   :  { %v1996_v26 = vpop.f32.mrf.mxu1  ;;  %v1349_v29 = vpop.f32.mrf.mxu0 }
 0x7cf   :  { %v1561_v27 = vmul.f32 -1.442695, %v1422_v20  ;;  %v1429_v30 = vadd.f32 %v1349_v29, %v1279_v28 }
 0x7d1   :  { %2108 = vpow2.f32 %v1561_v27  ;;  %v1562_v6 = vmul.f32 -1.442695, %v1429_v30 }
 0x7d3   :  { %2110 = vpow2.f32 %v1562_v6 }
 0x7de   :  { %v2109_v18 = vpop.eup %2108 }
 0x7df   :  { %v1426_v19 = vadd.f32 1.0, %v2109_v18 }
 0x7e0   :  { %v2111_v21 = vpop.eup %2110 }
 0x7e1   :  { %2112 = vrcp.f32 %v1426_v19  ;;  %v1433_v22 = vadd.f32 1.0, %v2111_v21 }
 0x7e3   :  { %2114 = vrcp.f32 %v1433_v22 }
 0x7ee   :  { %v2113_v23 = vpop.eup %2112 }
 0x7ef   :  { %v1437_v25 = vmul.f32 %v2113_v23, %v1436_v0 }
 0x7f0   :  { %v2115_v31 = vpop.eup %2114 }
 0x7f1   :  { %v1438_v62 = vadd.f32 %v1437_v25, %v1280_v24  ;;  %v1440_v32 = vsub.f32 1.0, %v2115_v31  ;;  %v1442_v35 = vmul.f32 %v2115_v31, %v3031_v49 }
 0x7f3   :  { %2116 = vtanh.f32 %v1438_v62 }
 0x800   :  { %v2117_v33 = vpop.eup %2116 }
 0x801   :  { %v1441_v34 = vmul.f32 %v2117_v33, %v1440_v32 }
 0x803   :  { %v1443_v36 = vadd.f32 %v1442_v35, %v1441_v34 }
 0x805   :  { %2030 = vmatmul.mubr.f32.vlgmr.msra.gmra.mxu0 %v1443_v36 }
 0x8c5   :  { %v1534_v38 = vpop.f32.mrf.mxu0 }
 0x8c6   :  { %v1535_v39 = vadd.f32 %v1563_v37, %v1534_v38 }
 0x8c7   :  { %v2031_v40 = vpop.f32.mrf.mxu0 }
 0x8c8   :  { %1539 = vst.msk [vmem:[%s3113_s5] sm:$0xff] %vm1538_vm1, %v1535_v39 }
 0x8c9   :  { %1544 = vsyncpa [#allocation4], 1 }
 0x8ca   :  { %1545 = vsyncpa [#allocation6], 1 }

</bundles_post_ra>
